<compile_context>
chip_gen: v7x
topology: tpu7x:2x2x1
jax: 0.10.0
libtpu: 0.0.40
codegen_flags: <defaults>
</compile_context>

<pallas_src>
import functools
import math

import jax
import jax.numpy as jnp
import numpy as np
from jax import lax
from jax.experimental import pallas as pl
from jax.experimental.pallas import tpu as pltpu

LN_EPS = 1e-5

CFG = dict(
    num_batch=2,
    cnn_ch_in=4, cnn_ch_out=8, cnn_kernel_size=3, cnn_stride=1, cnn_padding=1,
    cnn_num_layer=2, signal_len=16,
    trans_hidden=128,          # must equal cnn_ch_out * signal_len (view -> [B,1,hidden])
    trans_max_pos=8, trans_num_head=4, trans_feedforward=256,
    trans_drop_prob=0.1, trans_num_layer=1,
    cls_ch_out=4,
)


# ---------------------------------------------------------------------------
# Static slab layout (pure Python ints -- shared by the repack and the kernel)
# ---------------------------------------------------------------------------
def _r8(n):
    return -(-n // 8) * 8


def _layout(cfg):
    H, F, P = cfg["trans_hidden"], cfg["trans_feedforward"], cfg["trans_max_pos"]
    Ci, Co = cfg["cnn_ch_in"], cfg["cnn_ch_out"]
    K, L, pad = cfg["cnn_kernel_size"], cfg["signal_len"], cfg["cnn_padding"]
    n_conv = cfg["cnn_num_layer"]
    assert cfg["cnn_stride"] == 1          # TODO(synk): stride>1 unsupported
    assert 2 * pad == K - 1                # 'same'-length convs (default config)
    assert Co * L == H                     # conv output width == trans_hidden

    # slab A: lane-concat of all 128-row matrices
    a_cols, off = {}, 0
    for li in range(1, n_conv):
        a_cols[f"conv{li}"] = (off, H); off += H
    for name, wdt in (("w_in", 3 * H), ("w_o", H), ("w_ff1", F),
                      ("w_cls", H), ("seg", H)):
        a_cols[name] = (off, wdt); off += wdt
    a_width = off

    # slab B: row-concat of the remaining (128-column) matrices
    b_rows, roff = {}, 0
    b_rows["conv0"] = (roff, Ci * L); roff += _r8(Ci * L)
    b_rows["w_ff2"] = (roff, F);      roff += _r8(F)
    b_rows["segT"] = (roff, H);       roff += _r8(H)
    b_height = roff

    # slab C: pos embedding + every 1xH / 1x3H / 1xF bias & LN vector
    c_width = max(3 * H, F)
    c_rows, r = {"pos": (0, P)}, P
    for name in ("ln_g", "ln_b", "b_in", "b_misc", "b_ff1"):
        c_rows[name] = (r, 1); r += 1
    for li in range(n_conv):
        c_rows[f"b_conv{li}"] = (r, 1); r += 1
    c_height = _r8(r)

    return dict(n_conv=n_conv,
                a_cols=a_cols, a_width=a_width,
                b_rows=b_rows, b_height=b_height,
                c_rows=c_rows, c_width=c_width, c_height=c_height)


# ---------------------------------------------------------------------------
# One-time weight repack: Conv1d -> unpadded Toeplitz matrices + 3 VMEM slabs
# ---------------------------------------------------------------------------
def _conv_structure(K, L_in, L_out, pad):
    """0/1 placement tensor S[k, s, t]: tap k maps input pos s -> output col t."""
    S = np.zeros((K, L_in, L_out), np.float32)
    for t in range(L_out):
        for k in range(K):
            s = t + k - pad
            if 0 <= s < L_in:
                S[k, s, t] = 1.0
    return S


def prepare_params(params, cfg):
    lay = _layout(cfg)
    H, F, P = cfg["trans_hidden"], cfg["trans_feedforward"], cfg["trans_max_pos"]
    nh = cfg["trans_num_head"]
    hd = H // nh
    K, L, pad = cfg["cnn_kernel_size"], cfg["signal_len"], cfg["cnn_padding"]
    n_conv = lay["n_conv"]

    # --- conv layers -> banded matrices acting on flattened signals ----------
    conv_mats, conv_bias = [], []
    L_in = L
    for w, b in zip(params["conv_w"], params["conv_b"]):
        w = np.asarray(w, np.float32)
        b = np.asarray(b, np.float32)
        C_out, C_in, _ = w.shape
        L_out = L_in + 2 * pad - K + 1
        assert C_out * L_out == H
        S = _conv_structure(K, L_in, L_out, pad)
        Wm = np.einsum("cik,kst->isct", w, S).reshape(C_in * L_in, C_out * L_out)
        conv_mats.append(Wm.astype(np.float32))
        conv_bias.append(np.repeat(b, L_out).astype(np.float32))   # [C_out*L_out]
        L_in = L_out

    # --- head-segment matrices, zero-padded to [H, H] for slab packing -------
    seg = np.kron(np.eye(nh, dtype=np.float32), np.ones((hd, 1), np.float32))  # [H, nh]
    seg_pad = np.zeros((H, H), np.float32); seg_pad[:, :nh] = seg
    segT_pad = np.zeros((H, H), np.float32); segT_pad[:nh, :] = seg.T

    w_cls = np.asarray(params["w_cls"], np.float32)
    C = w_cls.shape[1]
    w_cls_pad = np.zeros((H, H), np.float32); w_cls_pad[:, :C] = w_cls
    b_cls_pad = np.zeros((H,), np.float32); b_cls_pad[:C] = np.asarray(params["b_cls"])

    # --- slab A: lane-concat of all 128-row matrices --------------------------
    slab_a = np.zeros((H, lay["a_width"]), np.float32)

    def put_a(name, mat):
        off, wdt = lay["a_cols"][name]
        assert mat.shape == (H, wdt), (name, mat.shape)
        slab_a[:, off:off + wdt] = mat

    for li in range(1, n_conv):
        put_a(f"conv{li}", conv_mats[li])
    put_a("w_in", np.asarray(params["w_in"], np.float32))
    put_a("w_o", np.asarray(params["w_o"], np.float32))
    put_a("w_ff1", np.asarray(params["w_ff1"], np.float32))
    put_a("w_cls", w_cls_pad)
    put_a("seg", seg_pad)

    # --- slab B: row-concat of the remaining (128-column) matrices ------------
    slab_b = np.zeros((lay["b_height"], H), np.float32)

    def put_b(name, mat):
        off, rows = lay["b_rows"][name]
        assert mat.shape == (rows, H), (name, mat.shape)
        slab_b[off:off + rows, :] = mat

    put_b("conv0", conv_mats[0])
    put_b("w_ff2", np.asarray(params["w_ff2"], np.float32))
    put_b("segT", segT_pad)

    # --- slab C: pos embedding + biases + LN params ---------------------------
    slab_c = np.zeros((lay["c_height"], lay["c_width"]), np.float32)
    cr = lay["c_rows"]
    slab_c[cr["pos"][0]:cr["pos"][0] + P, 0:H] = np.asarray(params["pos"], np.float32)
    slab_c[cr["ln_g"][0], 0:H] = np.asarray(params["ln_pos_g"])
    slab_c[cr["ln_g"][0], H:2 * H] = np.asarray(params["ln1_g"])
    slab_c[cr["ln_g"][0], 2 * H:3 * H] = np.asarray(params["ln2_g"])
    slab_c[cr["ln_b"][0], 0:H] = np.asarray(params["ln_pos_b"])
    slab_c[cr["ln_b"][0], H:2 * H] = np.asarray(params["ln1_b"])
    slab_c[cr["ln_b"][0], 2 * H:3 * H] = np.asarray(params["ln2_b"])
    slab_c[cr["b_in"][0], 0:3 * H] = np.asarray(params["b_in"])
    slab_c[cr["b_misc"][0], 0:H] = np.asarray(params["b_o"])
    slab_c[cr["b_misc"][0], H:2 * H] = b_cls_pad
    slab_c[cr["b_misc"][0], 2 * H:3 * H] = np.asarray(params["b_ff2"])
    slab_c[cr["b_ff1"][0], 0:F] = np.asarray(params["b_ff1"])
    for li in range(n_conv):
        slab_c[cr[f"b_conv{li}"][0], 0:H] = conv_bias[li]

    return dict(slab_a=jnp.asarray(slab_a),
                slab_b=jnp.asarray(slab_b),
                slab_c=jnp.asarray(slab_c))


# ---------------------------------------------------------------------------
# The single fused Pallas kernel (one grid step == one MusicEye.forward call)
# ---------------------------------------------------------------------------
def _ln(y, g, b):
    # PyTorch LayerNorm: biased var, eps inside sqrt; clamp var >= 0
    mu = jnp.mean(y, axis=-1, keepdims=True)
    var = jnp.maximum(jnp.mean(y * y, axis=-1, keepdims=True) - mu * mu, 0.0)
    return (y - mu) * lax.rsqrt(var + LN_EPS) * g + b


def _music_eye_kernel(x_ref, hid_in_ref, a_ref, b_ref, c_ref,
                      out_ref, hid_out_ref, hid_scr,
                      *, lay, B, P, H, F, hd):
    n_conv = lay["n_conv"]
    t = pl.program_id(0)

    @pl.when(t == 0)
    def _init():
        hid_scr[...] = hid_in_ref[...]          # seed the recurrent carry once

    def a_mat(name):
        off, wdt = lay["a_cols"][name]
        return a_ref[:, off:off + wdt]

    def b_mat(name):
        off, rows = lay["b_rows"][name]
        return b_ref[off:off + rows, :]

    def c_vec(name, c0, c1):
        r = lay["c_rows"][name][0]
        return c_ref[r:r + 1, c0:c1]

    # ---- AcousticsCNN: each layer = one lane-dense matmul + bias + ReLU -----
    h = x_ref[...]                                                  # [B, Cin*L]
    h = jnp.maximum(
        jnp.dot(h, b_mat("conv0"), preferred_element_type=jnp.float32)
        + c_vec("b_conv0", 0, H), 0.0)
    for li in range(1, n_conv):
        h = jnp.maximum(
            jnp.dot(h, a_mat(f"conv{li}"), preferred_element_type=jnp.float32)
            + c_vec(f"b_conv{li}", 0, H), 0.0)
    x_flat = h                                                      # [B, H] (== view([B,1,-1]))

    # ---- hidden-state shift (XLU roll + insert) + PositionEmbedding + LN ----
    pos = c_ref[0:P, 0:H]
    gp, bp = c_vec("ln_g", 0, H), c_vec("ln_b", 0, H)
    row_ids = lax.broadcasted_iota(jnp.int32, (P, H), 0)
    emb_blocks = []
    for b in range(B):
        old = hid_scr[b]                                            # [P, H]
        rolled = pltpu.roll(old, shift=P - 1, axis=0)               # rolled[j] = old[(j+1)%P]
        xrow = jnp.broadcast_to(x_flat[b:b + 1, :], (P, H))
        newh = jnp.where(row_ids == P - 1, xrow, rolled)
        hid_scr[b] = newh
        emb_blocks.append(_ln(newh + pos, gp, bp))
    hid_out_ref[...] = hid_scr[...]
    tok = jnp.concatenate(emb_blocks, axis=0)                       # [B*P, H], row = s*P + n

    # ---- self-attention (seq axis = num_batch S; batch axis = max_pos N) ----
    S, N = B, P
    qkv = (jnp.dot(tok, a_mat("w_in"), preferred_element_type=jnp.float32)
           + c_vec("b_in", 0, 3 * H))                               # [S*N, 3H]
    q, k, v = qkv[:, 0:H], qkv[:, H:2 * H], qkv[:, 2 * H:3 * H]
    qb = [q[s * N:(s + 1) * N, :] for s in range(S)]
    kb = [k[s * N:(s + 1) * N, :] for s in range(S)]
    vb = [v[s * N:(s + 1) * N, :] for s in range(S)]
    scale = 1.0 / math.sqrt(hd)

    # ONE batched MXU op for all S*S head-wise score reductions
    qk_stack = jnp.concatenate(
        [qb[s] * kb[tt] for s in range(S) for tt in range(S)], axis=0)  # [S*S*N, H]
    scores = jnp.dot(qk_stack, a_mat("seg"),
                     preferred_element_type=jnp.float32) * scale        # heads in lanes 0:nh

    def blk(m, s, tt):
        r0 = (s * S + tt) * N
        return m[r0:r0 + N, :]

    p_rows = []
    for s in range(S):
        m = blk(scores, s, 0)
        for tt in range(1, S):
            m = jnp.maximum(m, blk(scores, s, tt))
        es = [jnp.exp(blk(scores, s, tt) - m) for tt in range(S)]
        den = es[0]
        for tt in range(1, S):
            den = den + es[tt]
        inv = pl.reciprocal(den, approx=False)                      # exact (EUP)
        p_rows += [e * inv for e in es]
    p_stack = jnp.concatenate(p_rows, axis=0)                       # [S*S*N, H]
    # ONE batched MXU op broadcasting every head prob over its hd lanes
    p_full = jnp.dot(p_stack, b_mat("segT"), preferred_element_type=jnp.float32)

    ctx_blocks = []
    for s in range(S):
        ctx_s = blk(p_full, s, 0) * vb[0]
        for tt in range(1, S):
            ctx_s = ctx_s + blk(p_full, s, tt) * vb[tt]
        ctx_blocks.append(ctx_s)
    ctx = jnp.concatenate(ctx_blocks, axis=0)                       # [S*N, H]

    # ---- out-proj + residual + LN1 ------------------------------------------
    y1 = _ln(tok + jnp.dot(ctx, a_mat("w_o"), preferred_element_type=jnp.float32)
             + c_vec("b_misc", 0, H),
             c_vec("ln_g", H, 2 * H), c_vec("ln_b", H, 2 * H))

    # ---- FFN (relu) + residual + LN2 ----------------------------------------
    hh = jnp.maximum(jnp.dot(y1, a_mat("w_ff1"), preferred_element_type=jnp.float32)
                     + c_vec("b_ff1", 0, F), 0.0)
    y2 = _ln(y1 + jnp.dot(hh, b_mat("w_ff2"), preferred_element_type=jnp.float32)
             + c_vec("b_misc", 2 * H, 3 * H),
             c_vec("ln_g", 2 * H, 3 * H), c_vec("ln_b", 2 * H, 3 * H))

    # ---- ClassificationLayer: sigmoid(Linear), lane-dense 128-wide store -----
    logits = (jnp.dot(y2, a_mat("w_cls"), preferred_element_type=jnp.float32)
              + c_vec("b_misc", H, 2 * H))
    out_ref[...] = jax.nn.sigmoid(logits)


# ---------------------------------------------------------------------------
# Wrapper: T streaming MusicEye.forward steps in one pallas_call (grid=(T,))
# ---------------------------------------------------------------------------
def music_eye_forward(x_seq, hidden0, kp, cfg):
    """x_seq: [T, B, C_in, L]  ->  (cls_out [T, B, P, C], final hidden [B, P, H])."""
    T, B, C_in, L = x_seq.shape
    P, H = cfg["trans_max_pos"], cfg["trans_hidden"]
    C, F = cfg["cls_ch_out"], cfg["trans_feedforward"]
    hd = H // cfg["trans_num_head"]
    lay = _layout(cfg)

    x_flat = x_seq.reshape(T, B, C_in * L)        # contiguous flatten (free)

    kern = functools.partial(_music_eye_kernel, lay=lay, B=B, P=P, H=H, F=F, hd=hd)

    out_pad, hidden_new = pl.pallas_call(
        kern,
        grid=(T,),
        out_shape=(jax.ShapeDtypeStruct((T, B * P, H), jnp.float32),
                   jax.ShapeDtypeStruct((B, P, H), jnp.float32)),
        in_specs=[
            pl.BlockSpec((None, B, C_in * L), lambda t: (t, 0, 0)),   # per-step x
            pl.BlockSpec((B, P, H), lambda t: (0, 0, 0)),             # initial hidden (read @ t==0)
            pl.BlockSpec(kp["slab_a"].shape, lambda t: (0, 0)),       # resident weight slabs
            pl.BlockSpec(kp["slab_b"].shape, lambda t: (0, 0)),
            pl.BlockSpec(kp["slab_c"].shape, lambda t: (0, 0)),
        ],
        out_specs=(
            pl.BlockSpec((None, B * P, H), lambda t: (t, 0, 0)),      # lane-dense per-step cls out
            pl.BlockSpec((B, P, H), lambda t: (0, 0, 0)),             # final hidden state
        ),
        scratch_shapes=[pltpu.VMEM((B, P, H), jnp.float32)],          # recurrent carry
        input_output_aliases={1: 1},                                  # hidden in -> hidden out
        compiler_params=pltpu.CompilerParams(dimension_semantics=("arbitrary",)),
    )(x_flat, hidden0, kp["slab_a"], kp["slab_b"], kp["slab_c"])

    return out_pad[:, :, :C].reshape(T, B, P, C), hidden_new


# ---------------------------------------------------------------------------
# Pure-JAX reference (same math, raw weights, no Pallas) for correctness
# ---------------------------------------------------------------------------
def reference_forward(x, hidden_states, params, cfg):
    pad = cfg["cnn_padding"]
    h = x
    for w, b in zip(params["conv_w"], params["conv_b"]):
        K = w.shape[2]
        L_out = h.shape[2] + 2 * pad - K + 1
        xp = jnp.pad(h, ((0, 0), (0, 0), (pad, pad)))
        acc = jnp.zeros((h.shape[0], w.shape[0], L_out), jnp.float32)
        for k in range(K):
            acc = acc + jnp.einsum("oi,bil->bol", w[:, :, k], xp[:, :, k:k + L_out])
        h = jnp.maximum(acc + b[None, :, None], 0.0)

    B = x.shape[0]
    x_flat = h.reshape(B, 1, -1)
    hidden = jnp.concatenate([hidden_states[:, 1:, :], x_flat], axis=1)

    def ln(y, g, be):
        mu = y.mean(-1, keepdims=True)
        var = ((y - mu) ** 2).mean(-1, keepdims=True)
        return (y - mu) / jnp.sqrt(var + LN_EPS) * g + be

    emb = ln(hidden + params["pos"][None], params["ln_pos_g"], params["ln_pos_b"])
    S, N, E = emb.shape
    nh = cfg["trans_num_head"]
    hd = E // nh
    tok = emb.reshape(S * N, E)
    qkv = tok @ params["w_in"] + params["b_in"]

    def split(tq):
        return tq.reshape(S, N, nh, hd).transpose(1, 2, 0, 3).reshape(N * nh, S, hd)

    q, k, v = split(qkv[:, :E]), split(qkv[:, E:2 * E]), split(qkv[:, 2 * E:])
    s = jnp.einsum("gsd,gtd->gst", q, k) / jnp.sqrt(hd)
    p = jax.nn.softmax(s, axis=-1)
    ctx = jnp.einsum("gst,gtd->gsd", p, v)
    ctx = ctx.reshape(N, nh, S, hd).transpose(2, 0, 1, 3).reshape(S * N, E)

    y1 = ln(tok + ctx @ params["w_o"] + params["b_o"], params["ln1_g"], params["ln1_b"])
    hf = jnp.maximum(y1 @ params["w_ff1"] + params["b_ff1"], 0.0)
    y2 = ln(y1 + hf @ params["w_ff2"] + params["b_ff2"], params["ln2_g"], params["ln2_b"])
    out = jax.nn.sigmoid(y2 @ params["w_cls"] + params["b_cls"])
    return out.reshape(S, N, cfg["cls_ch_out"]), hidden


# ---------------------------------------------------------------------------
# Deterministic parameter init (synthetic; shapes per module __init__)
# ---------------------------------------------------------------------------
def init_params(key, cfg):
    H, F, P = cfg["trans_hidden"], cfg["trans_feedforward"], cfg["trans_max_pos"]
    Ci, Co, K = cfg["cnn_ch_in"], cfg["cnn_ch_out"], cfg["cnn_kernel_size"]
    C = cfg["cls_ch_out"]
    ks = list(jax.random.split(key, 24))

    def rnd(k, shape, s):
        return jax.random.normal(k, shape, jnp.float32) * s

    conv_w = [rnd(ks[0], (Co, Ci, K), 0.2)]
    conv_b = [rnd(ks[1], (Co,), 0.1)]
    for i in range(cfg["cnn_num_layer"] - 1):
        conv_w.append(rnd(ks[2 + 2 * i], (Co, Co, K), 0.2))
        conv_b.append(rnd(ks[3 + 2 * i], (Co,), 0.1))

    return dict(
        conv_w=conv_w, conv_b=conv_b,
        pos=rnd(ks[8], (P, H), 0.1),
        ln_pos_g=jnp.ones((H,), jnp.float32), ln_pos_b=jnp.zeros((H,), jnp.float32),
        # transformer weights stored pre-transposed ([in, out]) so y = x @ W + b
        w_in=rnd(ks[9], (H, 3 * H), 0.05), b_in=rnd(ks[10], (3 * H,), 0.02),
        w_o=rnd(ks[11], (H, H), 0.05), b_o=rnd(ks[12], (H,), 0.02),
        ln1_g=jnp.ones((H,), jnp.float32), ln1_b=jnp.zeros((H,), jnp.float32),
        w_ff1=rnd(ks[13], (H, F), 0.05), b_ff1=rnd(ks[14], (F,), 0.02),
        w_ff2=rnd(ks[15], (F, H), 0.05), b_ff2=rnd(ks[16], (H,), 0.02),
        ln2_g=jnp.ones((H,), jnp.float32), ln2_b=jnp.zeros((H,), jnp.float32),
        w_cls=rnd(ks[17], (H, C), 0.05), b_cls=rnd(ks[18], (C,), 0.02),
    )


if __name__ == "__main__":
    key = jax.random.PRNGKey(0)
    k_param, k_x = jax.random.split(key)
    params = init_params(k_param, CFG)
    kparams = prepare_params(params, CFG)       # one-time repack into 3 slabs

    B, P, H, C = CFG["num_batch"], CFG["trans_max_pos"], CFG["trans_hidden"], CFG["cls_ch_out"]
    T = 4                                       # streaming steps folded into ONE kernel call
    x_seq = jax.random.normal(
        k_x, (T, B, CFG["cnn_ch_in"], CFG["signal_len"]), jnp.float32)
    hidden0 = jnp.zeros((B, P, H), jnp.float32)

    fwd = jax.jit(functools.partial(music_eye_forward, cfg=CFG))
    out_seq, hidden_T = fwd(x_seq, hidden0, kparams)
    out_seq = jax.block_until_ready(out_seq)
    hidden_T = jax.block_until_ready(hidden_T)

    # pure-JAX reference: T sequential single-step forwards
    ref_outs, h_ref = [], hidden0
    for t in range(T):
        o_ref, h_ref = reference_forward(x_seq[t], h_ref, params, CFG)
        ref_outs.append(o_ref)
    ref_out_seq = jnp.stack(ref_outs, axis=0)

    assert out_seq.shape == (T, B, P, C), out_seq.shape
    assert hidden_T.shape == (B, P, H), hidden_T.shape
    assert bool(jnp.all(jnp.isfinite(out_seq)))
    err_out = float(jnp.max(jnp.abs(out_seq - ref_out_seq)))
    err_hid = float(jnp.max(jnp.abs(hidden_T - h_ref)))
    # tolerance dominated by the reference's own default TPU matmul precision
    assert err_out < 2e-2, f"cls output mismatch vs reference: {err_out}"
    assert err_hid < 1e-3, f"hidden-state mismatch vs reference: {err_hid}"

    print("KERNEL_OK")
</pallas_src>

<mosaic_0001>
module attributes {stable_mosaic.version = 11 : i64} {
  func.func @_music_eye_kernel(%arg0: i32, %arg1: memref<1x2x64xf32, #tpu.memory_space<vmem>>, %arg2: memref<2x8x128xf32, #tpu.memory_space<vmem>>, %arg3: memref<128x1152xf32, #tpu.memory_space<vmem>>, %arg4: memref<448x128xf32, #tpu.memory_space<vmem>>, %arg5: memref<16x384xf32, #tpu.memory_space<vmem>>, %arg6: memref<1x16x128xf32, #tpu.memory_space<vmem>>, %arg7: memref<2x8x128xf32, #tpu.memory_space<vmem>>, %arg8: memref<2x8x128xf32, #tpu.memory_space<vmem>>) attributes {dimension_semantics = [#tpu.dimension_semantics<arbitrary>], iteration_bounds = array<i64: 4>, scalar_prefetch = 0 : i64, scratch_operands = 1 : i64, tpu.core_type = #tpu.core_type<tc>, window_params = [{transform_indices = @transform_0, window_bounds = array<i64: 1, 2, 64>}, {pipeline_mode = #tpu.pipeline_mode<synchronous>, transform_indices = @transform_1, window_bounds = array<i64: 2, 8, 128>}, {pipeline_mode = #tpu.pipeline_mode<synchronous>, transform_indices = @transform_2, window_bounds = array<i64: 128, 1152>}, {pipeline_mode = #tpu.pipeline_mode<synchronous>, transform_indices = @transform_3, window_bounds = array<i64: 448, 128>}, {pipeline_mode = #tpu.pipeline_mode<synchronous>, transform_indices = @transform_4, window_bounds = array<i64: 16, 384>}, {transform_indices = @transform_5, window_bounds = array<i64: 1, 16, 128>}, {pipeline_mode = #tpu.pipeline_mode<synchronous>, transform_indices = @transform_6, window_bounds = array<i64: 2, 8, 128>}]} {
    %c0_i32 = arith.constant 0 : i32
    %0 = arith.cmpi eq, %arg0, %c0_i32 : i32
    %1 = arith.extui %0 : i1 to i32
    %c0_i32_0 = arith.constant 0 : i32
    %2 = arith.cmpi ne, %1, %c0_i32_0 : i32
    scf.if %2 {
      %c0_94 = arith.constant 0 : index
      %c0_95 = arith.constant 0 : index
      %c0_96 = arith.constant 0 : index
      %247 = vector.load %arg2[%c0_94, %c0_95, %c0_96] : memref<2x8x128xf32, #tpu.memory_space<vmem>>, vector<2x8x128xf32>
      %c0_97 = arith.constant 0 : index
      %c0_98 = arith.constant 0 : index
      %c0_99 = arith.constant 0 : index
      %248 = vector.load %arg8[%c0_97, %c0_98, %c0_99] : memref<2x8x128xf32, #tpu.memory_space<vmem>>, vector<2x8x128xf32>
      tpu.vector_store %arg8[%c0_97, %c0_98, %c0_99], %247 {strides = array<i32>} : memref<2x8x128xf32, #tpu.memory_space<vmem>>, vector<2x8x128xf32>,
    } else {
    }
    %c0 = arith.constant 0 : index
    %c0_1 = arith.constant 0 : index
    %c0_2 = arith.constant 0 : index
    %3 = vector.load %arg1[%c0, %c0_1, %c0_2] : memref<1x2x64xf32, #tpu.memory_space<vmem>>, vector<1x2x64xf32>
    %4 = vector.shape_cast %3 : vector<1x2x64xf32> to vector<2x64xf32>
    %c0_3 = arith.constant 0 : index
    %c0_4 = arith.constant 0 : index
    %5 = vector.load %arg4[%c0_3, %c0_4] : memref<448x128xf32, #tpu.memory_space<vmem>>, vector<64x128xf32>
    %cst = arith.constant dense<0.000000e+00> : vector<2x128xf32>
    %6 = tpu.matmul %4, %5, %cst {dimension_numbers = #tpu.dot_dimension_numbers<[1], [0], [0], [1], [0, 0, 1, 1], [], []>} : vector<2x64xf32>, vector<64x128xf32>, vector<2x128xf32> -> vector<2x128xf32>
    %c13 = arith.constant 13 : index
    %c0_5 = arith.constant 0 : index
    %7 = vector.load %arg5[%c13, %c0_5] : memref<16x384xf32, #tpu.memory_space<vmem>>, vector<1x128xf32>
    %8 = vector.broadcast %7 : vector<1x128xf32> to vector<2x128xf32>
    %9 = arith.addf %6, %8 : vector<2x128xf32>
    %cst_6 = arith.constant 0.000000e+00 : f32
    %10 = vector.broadcast %cst_6 : f32 to vector<2x128xf32>
    %11 = arith.maximumf %9, %10 : vector<2x128xf32>
    %c0_7 = arith.constant 0 : index
    %c0_8 = arith.constant 0 : index
    %12 = vector.load %arg3[%c0_7, %c0_8] : memref<128x1152xf32, #tpu.memory_space<vmem>>, vector<128x128xf32>
    %cst_9 = arith.constant dense<0.000000e+00> : vector<2x128xf32>
    %13 = tpu.matmul %11, %12, %cst_9 {dimension_numbers = #tpu.dot_dimension_numbers<[1], [0], [0], [1], [0, 0, 1, 1], [], []>} : vector<2x128xf32>, vector<128x128xf32>, vector<2x128xf32> -> vector<2x128xf32>
    %c14 = arith.constant 14 : index
    %c0_10 = arith.constant 0 : index
    %14 = vector.load %arg5[%c14, %c0_10] : memref<16x384xf32, #tpu.memory_space<vmem>>, vector<1x128xf32>
    %15 = vector.broadcast %14 : vector<1x128xf32> to vector<2x128xf32>
    %16 = arith.addf %13, %15 : vector<2x128xf32>
    %cst_11 = arith.constant 0.000000e+00 : f32
    %17 = vector.broadcast %cst_11 : f32 to vector<2x128xf32>
    %18 = arith.maximumf %16, %17 : vector<2x128xf32>
    %c0_12 = arith.constant 0 : index
    %c0_13 = arith.constant 0 : index
    %19 = vector.load %arg5[%c0_12, %c0_13] : memref<16x384xf32, #tpu.memory_space<vmem>>, vector<8x128xf32>
    %c8 = arith.constant 8 : index
    %c0_14 = arith.constant 0 : index
    %20 = vector.load %arg5[%c8, %c0_14] : memref<16x384xf32, #tpu.memory_space<vmem>>, vector<1x128xf32>
    %c9 = arith.constant 9 : index
    %c0_15 = arith.constant 0 : index
    %21 = vector.load %arg5[%c9, %c0_15] : memref<16x384xf32, #tpu.memory_space<vmem>>, vector<1x128xf32>
    %22 = tpu.iota {dimensions = array<i32: 0>} : vector<8x128xi32>
    %c0_16 = arith.constant 0 : index
    %c0_17 = arith.constant 0 : index
    %c0_18 = arith.constant 0 : index
    %23 = vector.load %arg8[%c0_16, %c0_17, %c0_18] : memref<2x8x128xf32, #tpu.memory_space<vmem>>, vector<1x8x128xf32>
    %24 = vector.shape_cast %23 : vector<1x8x128xf32> to vector<8x128xf32>
    %c7_i32 = arith.constant 7 : i32
    %25 = tpu.dynamic_rotate %24 by %c7_i32 dim 0 : vector<8x128xf32>, i32 -> vector<8x128xf32>
    %26 = vector.extract_strided_slice %18 {offsets = [0, 0], sizes = [1, 128], strides = [1, 1]} : vector<2x128xf32> to vector<1x128xf32>
    %27 = vector.shape_cast %26 : vector<1x128xf32> to vector<1x128xf32>
    %28 = vector.broadcast %27 : vector<1x128xf32> to vector<8x128xf32>
    %c7_i32_19 = arith.constant 7 : i32
    %29 = vector.broadcast %c7_i32_19 : i32 to vector<8x128xi32>
    %30 = arith.cmpi eq, %22, %29 : vector<8x128xi32>
    %31 = arith.select %30, %28, %25 : vector<8x128xi1>, vector<8x128xf32>
    %c0_20 = arith.constant 0 : index
    %c0_21 = arith.constant 0 : index
    %c0_22 = arith.constant 0 : index
    %32 = vector.load %arg8[%c0_20, %c0_21, %c0_22] : memref<2x8x128xf32, #tpu.memory_space<vmem>>, vector<1x8x128xf32>
    %33 = vector.shape_cast %32 : vector<1x8x128xf32> to vector<8x128xf32>
    %34 = vector.shape_cast %31 : vector<8x128xf32> to vector<1x8x128xf32>
    tpu.vector_store %arg8[%c0_20, %c0_21, %c0_22], %34 {strides = array<i32>} : memref<2x8x128xf32, #tpu.memory_space<vmem>>, vector<1x8x128xf32>,
    %35 = arith.addf %31, %19 : vector<8x128xf32>
    %cst_23 = arith.constant dense<0.000000e+00> : vector<8xf32>
    %36 = vector.multi_reduction <add>, %35, %cst_23 [1] : vector<8x128xf32> to vector<8xf32>
    %37 = vector.shape_cast %36 : vector<8xf32> to vector<8x1xf32>
    %cst_24 = arith.constant 1.280000e+02 : f32
    %38 = vector.broadcast %cst_24 : f32 to vector<8x1xf32>
    %39 = arith.divf %37, %38 : vector<8x1xf32>
    %40 = arith.mulf %35, %35 : vector<8x128xf32>
    %cst_25 = arith.constant dense<0.000000e+00> : vector<8xf32>
    %41 = vector.multi_reduction <add>, %40, %cst_25 [1] : vector<8x128xf32> to vector<8xf32>
    %42 = vector.shape_cast %41 : vector<8xf32> to vector<8x1xf32>
    %cst_26 = arith.constant 1.280000e+02 : f32
    %43 = vector.broadcast %cst_26 : f32 to vector<8x1xf32>
    %44 = arith.divf %42, %43 : vector<8x1xf32>
    %45 = arith.mulf %39, %39 : vector<8x1xf32>
    %46 = arith.subf %44, %45 : vector<8x1xf32>
    %cst_27 = arith.constant 0.000000e+00 : f32
    %47 = vector.broadcast %cst_27 : f32 to vector<8x1xf32>
    %48 = arith.maximumf %46, %47 : vector<8x1xf32>
    %49 = vector.broadcast %39 : vector<8x1xf32> to vector<8x128xf32>
    %50 = arith.subf %35, %49 : vector<8x128xf32>
    %cst_28 = arith.constant 9.99999974E-6 : f32
    %51 = vector.broadcast %cst_28 : f32 to vector<8x1xf32>
    %52 = arith.addf %48, %51 : vector<8x1xf32>
    %53 = math.rsqrt %52 : vector<8x1xf32>
    %54 = vector.broadcast %53 : vector<8x1xf32> to vector<8x128xf32>
    %55 = arith.mulf %50, %54 : vector<8x128xf32>
    %56 = vector.broadcast %20 : vector<1x128xf32> to vector<8x128xf32>
    %57 = arith.mulf %55, %56 : vector<8x128xf32>
    %58 = vector.broadcast %21 : vector<1x128xf32> to vector<8x128xf32>
    %59 = arith.addf %57, %58 : vector<8x128xf32>
    %c1 = arith.constant 1 : index
    %c0_29 = arith.constant 0 : index
    %c0_30 = arith.constant 0 : index
    %60 = vector.load %arg8[%c1, %c0_29, %c0_30] : memref<2x8x128xf32, #tpu.memory_space<vmem>>, vector<1x8x128xf32>
    %61 = vector.shape_cast %60 : vector<1x8x128xf32> to vector<8x128xf32>
    %c7_i32_31 = arith.constant 7 : i32
    %62 = tpu.dynamic_rotate %61 by %c7_i32_31 dim 0 : vector<8x128xf32>, i32 -> vector<8x128xf32>
    %63 = vector.extract_strided_slice %18 {offsets = [1, 0], sizes = [1, 128], strides = [1, 1]} : vector<2x128xf32> to vector<1x128xf32>
    %64 = vector.shape_cast %63 : vector<1x128xf32> to vector<1x128xf32>
    %65 = vector.broadcast %64 : vector<1x128xf32> to vector<8x128xf32>
    %c7_i32_32 = arith.constant 7 : i32
    %66 = vector.broadcast %c7_i32_32 : i32 to vector<8x128xi32>
    %67 = arith.cmpi eq, %22, %66 : vector<8x128xi32>
    %68 = arith.select %67, %65, %62 : vector<8x128xi1>, vector<8x128xf32>
    %c1_33 = arith.constant 1 : index
    %c0_34 = arith.constant 0 : index
    %c0_35 = arith.constant 0 : index
    %69 = vector.load %arg8[%c1_33, %c0_34, %c0_35] : memref<2x8x128xf32, #tpu.memory_space<vmem>>, vector<1x8x128xf32>
    %70 = vector.shape_cast %69 : vector<1x8x128xf32> to vector<8x128xf32>
    %71 = vector.shape_cast %68 : vector<8x128xf32> to vector<1x8x128xf32>
    tpu.vector_store %arg8[%c1_33, %c0_34, %c0_35], %71 {strides = array<i32>} : memref<2x8x128xf32, #tpu.memory_space<vmem>>, vector<1x8x128xf32>,
    %72 = arith.addf %68, %19 : vector<8x128xf32>
    %cst_36 = arith.constant dense<0.000000e+00> : vector<8xf32>
    %73 = vector.multi_reduction <add>, %72, %cst_36 [1] : vector<8x128xf32> to vector<8xf32>
    %74 = vector.shape_cast %73 : vector<8xf32> to vector<8x1xf32>
    %cst_37 = arith.constant 1.280000e+02 : f32
    %75 = vector.broadcast %cst_37 : f32 to vector<8x1xf32>
    %76 = arith.divf %74, %75 : vector<8x1xf32>
    %77 = arith.mulf %72, %72 : vector<8x128xf32>
    %cst_38 = arith.constant dense<0.000000e+00> : vector<8xf32>
    %78 = vector.multi_reduction <add>, %77, %cst_38 [1] : vector<8x128xf32> to vector<8xf32>
    %79 = vector.shape_cast %78 : vector<8xf32> to vector<8x1xf32>
    %cst_39 = arith.constant 1.280000e+02 : f32
    %80 = vector.broadcast %cst_39 : f32 to vector<8x1xf32>
    %81 = arith.divf %79, %80 : vector<8x1xf32>
    %82 = arith.mulf %76, %76 : vector<8x1xf32>
    %83 = arith.subf %81, %82 : vector<8x1xf32>
    %cst_40 = arith.constant 0.000000e+00 : f32
    %84 = vector.broadcast %cst_40 : f32 to vector<8x1xf32>
    %85 = arith.maximumf %83, %84 : vector<8x1xf32>
    %86 = vector.broadcast %76 : vector<8x1xf32> to vector<8x128xf32>
    %87 = arith.subf %72, %86 : vector<8x128xf32>
    %cst_41 = arith.constant 9.99999974E-6 : f32
    %88 = vector.broadcast %cst_41 : f32 to vector<8x1xf32>
    %89 = arith.addf %85, %88 : vector<8x1xf32>
    %90 = math.rsqrt %89 : vector<8x1xf32>
    %91 = vector.broadcast %90 : vector<8x1xf32> to vector<8x128xf32>
    %92 = arith.mulf %87, %91 : vector<8x128xf32>
    %93 = vector.broadcast %20 : vector<1x128xf32> to vector<8x128xf32>
    %94 = arith.mulf %92, %93 : vector<8x128xf32>
    %95 = vector.broadcast %21 : vector<1x128xf32> to vector<8x128xf32>
    %96 = arith.addf %94, %95 : vector<8x128xf32>
    %c0_42 = arith.constant 0 : index
    %c0_43 = arith.constant 0 : index
    %c0_44 = arith.constant 0 : index
    %97 = vector.load %arg8[%c0_42, %c0_43, %c0_44] : memref<2x8x128xf32, #tpu.memory_space<vmem>>, vector<2x8x128xf32>
    %c0_45 = arith.constant 0 : index
    %c0_46 = arith.constant 0 : index
    %c0_47 = arith.constant 0 : index
    %98 = vector.load %arg7[%c0_45, %c0_46, %c0_47] : memref<2x8x128xf32, #tpu.memory_space<vmem>>, vector<2x8x128xf32>
    tpu.vector_store %arg7[%c0_45, %c0_46, %c0_47], %97 {strides = array<i32>} : memref<2x8x128xf32, #tpu.memory_space<vmem>>, vector<2x8x128xf32>,
    %99 = tpu.concatenate %59, %96 in 0 : vector<8x128xf32>, vector<8x128xf32> -> vector<16x128xf32>
    %c0_48 = arith.constant 0 : index
    %c128 = arith.constant 128 : index
    %100 = vector.load %arg3[%c0_48, %c128] : memref<128x1152xf32, #tpu.memory_space<vmem>>, vector<128x384xf32>
    %cst_49 = arith.constant dense<0.000000e+00> : vector<16x384xf32>
    %101 = tpu.matmul %99, %100, %cst_49 {dimension_numbers = #tpu.dot_dimension_numbers<[1], [0], [0], [1], [0, 0, 1, 1], [], []>} : vector<16x128xf32>, vector<128x384xf32>, vector<16x384xf32> -> vector<16x384xf32>
    %c10 = arith.constant 10 : index
    %c0_50 = arith.constant 0 : index
    %102 = vector.load %arg5[%c10, %c0_50] : memref<16x384xf32, #tpu.memory_space<vmem>>, vector<1x384xf32>
    %103 = vector.broadcast %102 : vector<1x384xf32> to vector<16x384xf32>
    %104 = arith.addf %101, %103 : vector<16x384xf32>
    %105 = vector.extract_strided_slice %104 {offsets = [0, 0], sizes = [16, 128], strides = [1, 1]} : vector<16x384xf32> to vector<16x128xf32>
    %106 = vector.extract_strided_slice %104 {offsets = [0, 128], sizes = [16, 128], strides = [1, 1]} : vector<16x384xf32> to vector<16x128xf32>
    %107 = vector.extract_strided_slice %104 {offsets = [0, 256], sizes = [16, 128], strides = [1, 1]} : vector<16x384xf32> to vector<16x128xf32>
    %108 = vector.extract_strided_slice %105 {offsets = [0, 0], sizes = [8, 128], strides = [1, 1]} : vector<16x128xf32> to vector<8x128xf32>
    %109 = vector.extract_strided_slice %105 {offsets = [8, 0], sizes = [8, 128], strides = [1, 1]} : vector<16x128xf32> to vector<8x128xf32>
    %110 = vector.extract_strided_slice %106 {offsets = [0, 0], sizes = [8, 128], strides = [1, 1]} : vector<16x128xf32> to vector<8x128xf32>
    %111 = vector.extract_strided_slice %106 {offsets = [8, 0], sizes = [8, 128], strides = [1, 1]} : vector<16x128xf32> to vector<8x128xf32>
    %112 = vector.extract_strided_slice %107 {offsets = [0, 0], sizes = [8, 128], strides = [1, 1]} : vector<16x128xf32> to vector<8x128xf32>
    %113 = vector.extract_strided_slice %107 {offsets = [8, 0], sizes = [8, 128], strides = [1, 1]} : vector<16x128xf32> to vector<8x128xf32>
    %114 = arith.mulf %108, %110 : vector<8x128xf32>
    %115 = arith.mulf %108, %111 : vector<8x128xf32>
    %116 = arith.mulf %109, %110 : vector<8x128xf32>
    %117 = arith.mulf %109, %111 : vector<8x128xf32>
    %118 = tpu.concatenate %114, %115, %116, %117 in 0 : vector<8x128xf32>, vector<8x128xf32>, vector<8x128xf32>, vector<8x128xf32> -> vector<32x128xf32>
    %c0_51 = arith.constant 0 : index
    %c1024 = arith.constant 1024 : index
    %119 = vector.load %arg3[%c0_51, %c1024] : memref<128x1152xf32, #tpu.memory_space<vmem>>, vector<128x128xf32>
    %cst_52 = arith.constant dense<0.000000e+00> : vector<32x128xf32>
    %120 = tpu.matmul %118, %119, %cst_52 {dimension_numbers = #tpu.dot_dimension_numbers<[1], [0], [0], [1], [0, 0, 1, 1], [], []>} : vector<32x128xf32>, vector<128x128xf32>, vector<32x128xf32> -> vector<32x128xf32>
    %cst_53 = arith.constant 0.176776692 : f32
    %121 = vector.broadcast %cst_53 : f32 to vector<32x128xf32>
    %122 = arith.mulf %120, %121 : vector<32x128xf32>
    %123 = vector.extract_strided_slice %122 {offsets = [0, 0], sizes = [8, 128], strides = [1, 1]} : vector<32x128xf32> to vector<8x128xf32>
    %124 = vector.extract_strided_slice %122 {offsets = [8, 0], sizes = [8, 128], strides = [1, 1]} : vector<32x128xf32> to vector<8x128xf32>
    %125 = arith.maximumf %123, %124 : vector<8x128xf32>
    %126 = vector.extract_strided_slice %122 {offsets = [0, 0], sizes = [8, 128], strides = [1, 1]} : vector<32x128xf32> to vector<8x128xf32>
    %127 = arith.subf %126, %125 : vector<8x128xf32>
    %128 = math.exp %127 : vector<8x128xf32>
    %129 = vector.extract_strided_slice %122 {offsets = [8, 0], sizes = [8, 128], strides = [1, 1]} : vector<32x128xf32> to vector<8x128xf32>
    %130 = arith.subf %129, %125 : vector<8x128xf32>
    %131 = math.exp %130 : vector<8x128xf32>
    %132 = arith.addf %128, %131 : vector<8x128xf32>
    %133 = tpu.reciprocal %132 : vector<8x128xf32> -> vector<8x128xf32>
    %134 = arith.mulf %128, %133 : vector<8x128xf32>
    %135 = arith.mulf %131, %133 : vector<8x128xf32>
    %136 = vector.extract_strided_slice %122 {offsets = [16, 0], sizes = [8, 128], strides = [1, 1]} : vector<32x128xf32> to vector<8x128xf32>
    %137 = vector.extract_strided_slice %122 {offsets = [24, 0], sizes = [8, 128], strides = [1, 1]} : vector<32x128xf32> to vector<8x128xf32>
    %138 = arith.maximumf %136, %137 : vector<8x128xf32>
    %139 = vector.extract_strided_slice %122 {offsets = [16, 0], sizes = [8, 128], strides = [1, 1]} : vector<32x128xf32> to vector<8x128xf32>
    %140 = arith.subf %139, %138 : vector<8x128xf32>
    %141 = math.exp %140 : vector<8x128xf32>
    %142 = vector.extract_strided_slice %122 {offsets = [24, 0], sizes = [8, 128], strides = [1, 1]} : vector<32x128xf32> to vector<8x128xf32>
    %143 = arith.subf %142, %138 : vector<8x128xf32>
    %144 = math.exp %143 : vector<8x128xf32>
    %145 = arith.addf %141, %144 : vector<8x128xf32>
    %146 = tpu.reciprocal %145 : vector<8x128xf32> -> vector<8x128xf32>
    %147 = arith.mulf %141, %146 : vector<8x128xf32>
    %148 = arith.mulf %144, %146 : vector<8x128xf32>
    %149 = tpu.concatenate %134, %135, %147, %148 in 0 : vector<8x128xf32>, vector<8x128xf32>, vector<8x128xf32>, vector<8x128xf32> -> vector<32x128xf32>
    %c320 = arith.constant 320 : index
    %c0_54 = arith.constant 0 : index
    %150 = vector.load %arg4[%c320, %c0_54] : memref<448x128xf32, #tpu.memory_space<vmem>>, vector<128x128xf32>
    %cst_55 = arith.constant dense<0.000000e+00> : vector<32x128xf32>
    %151 = tpu.matmul %149, %150, %cst_55 {dimension_numbers = #tpu.dot_dimension_numbers<[1], [0], [0], [1], [0, 0, 1, 1], [], []>} : vector<32x128xf32>, vector<128x128xf32>, vector<32x128xf32> -> vector<32x128xf32>
    %152 = vector.extract_strided_slice %151 {offsets = [0, 0], sizes = [8, 128], strides = [1, 1]} : vector<32x128xf32> to vector<8x128xf32>
    %153 = arith.mulf %152, %112 : vector<8x128xf32>
    %154 = vector.extract_strided_slice %151 {offsets = [8, 0], sizes = [8, 128], strides = [1, 1]} : vector<32x128xf32> to vector<8x128xf32>
    %155 = arith.mulf %154, %113 : vector<8x128xf32>
    %156 = arith.addf %153, %155 : vector<8x128xf32>
    %157 = vector.extract_strided_slice %151 {offsets = [16, 0], sizes = [8, 128], strides = [1, 1]} : vector<32x128xf32> to vector<8x128xf32>
    %158 = arith.mulf %157, %112 : vector<8x128xf32>
    %159 = vector.extract_strided_slice %151 {offsets = [24, 0], sizes = [8, 128], strides = [1, 1]} : vector<32x128xf32> to vector<8x128xf32>
    %160 = arith.mulf %159, %113 : vector<8x128xf32>
    %161 = arith.addf %158, %160 : vector<8x128xf32>
    %162 = tpu.concatenate %156, %161 in 0 : vector<8x128xf32>, vector<8x128xf32> -> vector<16x128xf32>
    %c0_56 = arith.constant 0 : index
    %c512 = arith.constant 512 : index
    %163 = vector.load %arg3[%c0_56, %c512] : memref<128x1152xf32, #tpu.memory_space<vmem>>, vector<128x128xf32>
    %cst_57 = arith.constant dense<0.000000e+00> : vector<16x128xf32>
    %164 = tpu.matmul %162, %163, %cst_57 {dimension_numbers = #tpu.dot_dimension_numbers<[1], [0], [0], [1], [0, 0, 1, 1], [], []>} : vector<16x128xf32>, vector<128x128xf32>, vector<16x128xf32> -> vector<16x128xf32>
    %165 = arith.addf %99, %164 : vector<16x128xf32>
    %c11 = arith.constant 11 : index
    %c0_58 = arith.constant 0 : index
    %166 = vector.load %arg5[%c11, %c0_58] : memref<16x384xf32, #tpu.memory_space<vmem>>, vector<1x128xf32>
    %167 = vector.broadcast %166 : vector<1x128xf32> to vector<16x128xf32>
    %168 = arith.addf %165, %167 : vector<16x128xf32>
    %c8_59 = arith.constant 8 : index
    %c128_60 = arith.constant 128 : index
    %169 = vector.load %arg5[%c8_59, %c128_60] : memref<16x384xf32, #tpu.memory_space<vmem>>, vector<1x128xf32>
    %c9_61 = arith.constant 9 : index
    %c128_62 = arith.constant 128 : index
    %170 = vector.load %arg5[%c9_61, %c128_62] : memref<16x384xf32, #tpu.memory_space<vmem>>, vector<1x128xf32>
    %cst_63 = arith.constant dense<0.000000e+00> : vector<16xf32>
    %171 = vector.multi_reduction <add>, %168, %cst_63 [1] : vector<16x128xf32> to vector<16xf32>
    %172 = vector.shape_cast %171 : vector<16xf32> to vector<16x1xf32>
    %cst_64 = arith.constant 1.280000e+02 : f32
    %173 = vector.broadcast %cst_64 : f32 to vector<16x1xf32>
    %174 = arith.divf %172, %173 : vector<16x1xf32>
    %175 = arith.mulf %168, %168 : vector<16x128xf32>
    %cst_65 = arith.constant dense<0.000000e+00> : vector<16xf32>
    %176 = vector.multi_reduction <add>, %175, %cst_65 [1] : vector<16x128xf32> to vector<16xf32>
    %177 = vector.shape_cast %176 : vector<16xf32> to vector<16x1xf32>
    %cst_66 = arith.constant 1.280000e+02 : f32
    %178 = vector.broadcast %cst_66 : f32 to vector<16x1xf32>
    %179 = arith.divf %177, %178 : vector<16x1xf32>
    %180 = arith.mulf %174, %174 : vector<16x1xf32>
    %181 = arith.subf %179, %180 : vector<16x1xf32>
    %cst_67 = arith.constant 0.000000e+00 : f32
    %182 = vector.broadcast %cst_67 : f32 to vector<16x1xf32>
    %183 = arith.maximumf %181, %182 : vector<16x1xf32>
    %184 = vector.broadcast %174 : vector<16x1xf32> to vector<16x128xf32>
    %185 = arith.subf %168, %184 : vector<16x128xf32>
    %cst_68 = arith.constant 9.99999974E-6 : f32
    %186 = vector.broadcast %cst_68 : f32 to vector<16x1xf32>
    %187 = arith.addf %183, %186 : vector<16x1xf32>
    %188 = math.rsqrt %187 : vector<16x1xf32>
    %189 = vector.broadcast %188 : vector<16x1xf32> to vector<16x128xf32>
    %190 = arith.mulf %185, %189 : vector<16x128xf32>
    %191 = vector.broadcast %169 : vector<1x128xf32> to vector<16x128xf32>
    %192 = arith.mulf %190, %191 : vector<16x128xf32>
    %193 = vector.broadcast %170 : vector<1x128xf32> to vector<16x128xf32>
    %194 = arith.addf %192, %193 : vector<16x128xf32>
    %c0_69 = arith.constant 0 : index
    %c640 = arith.constant 640 : index
    %195 = vector.load %arg3[%c0_69, %c640] : memref<128x1152xf32, #tpu.memory_space<vmem>>, vector<128x256xf32>
    %cst_70 = arith.constant dense<0.000000e+00> : vector<16x256xf32>
    %196 = tpu.matmul %194, %195, %cst_70 {dimension_numbers = #tpu.dot_dimension_numbers<[1], [0], [0], [1], [0, 0, 1, 1], [], []>} : vector<16x128xf32>, vector<128x256xf32>, vector<16x256xf32> -> vector<16x256xf32>
    %c12 = arith.constant 12 : index
    %c0_71 = arith.constant 0 : index
    %197 = vector.load %arg5[%c12, %c0_71] : memref<16x384xf32, #tpu.memory_space<vmem>>, vector<1x256xf32>
    %198 = vector.broadcast %197 : vector<1x256xf32> to vector<16x256xf32>
    %199 = arith.addf %196, %198 : vector<16x256xf32>
    %cst_72 = arith.constant 0.000000e+00 : f32
    %200 = vector.broadcast %cst_72 : f32 to vector<16x256xf32>
    %201 = arith.maximumf %199, %200 : vector<16x256xf32>
    %c64 = arith.constant 64 : index
    %c0_73 = arith.constant 0 : index
    %202 = vector.load %arg4[%c64, %c0_73] : memref<448x128xf32, #tpu.memory_space<vmem>>, vector<256x128xf32>
    %cst_74 = arith.constant dense<0.000000e+00> : vector<16x128xf32>
    %203 = tpu.matmul %201, %202, %cst_74 {dimension_numbers = #tpu.dot_dimension_numbers<[1], [0], [0], [1], [0, 0, 1, 1], [], []>} : vector<16x256xf32>, vector<256x128xf32>, vector<16x128xf32> -> vector<16x128xf32>
    %204 = arith.addf %194, %203 : vector<16x128xf32>
    %c11_75 = arith.constant 11 : index
    %c256 = arith.constant 256 : index
    %205 = vector.load %arg5[%c11_75, %c256] : memref<16x384xf32, #tpu.memory_space<vmem>>, vector<1x128xf32>
    %206 = vector.broadcast %205 : vector<1x128xf32> to vector<16x128xf32>
    %207 = arith.addf %204, %206 : vector<16x128xf32>
    %c8_76 = arith.constant 8 : index
    %c256_77 = arith.constant 256 : index
    %208 = vector.load %arg5[%c8_76, %c256_77] : memref<16x384xf32, #tpu.memory_space<vmem>>, vector<1x128xf32>
    %c9_78 = arith.constant 9 : index
    %c256_79 = arith.constant 256 : index
    %209 = vector.load %arg5[%c9_78, %c256_79] : memref<16x384xf32, #tpu.memory_space<vmem>>, vector<1x128xf32>
    %cst_80 = arith.constant dense<0.000000e+00> : vector<16xf32>
    %210 = vector.multi_reduction <add>, %207, %cst_80 [1] : vector<16x128xf32> to vector<16xf32>
    %211 = vector.shape_cast %210 : vector<16xf32> to vector<16x1xf32>
    %cst_81 = arith.constant 1.280000e+02 : f32
    %212 = vector.broadcast %cst_81 : f32 to vector<16x1xf32>
    %213 = arith.divf %211, %212 : vector<16x1xf32>
    %214 = arith.mulf %207, %207 : vector<16x128xf32>
    %cst_82 = arith.constant dense<0.000000e+00> : vector<16xf32>
    %215 = vector.multi_reduction <add>, %214, %cst_82 [1] : vector<16x128xf32> to vector<16xf32>
    %216 = vector.shape_cast %215 : vector<16xf32> to vector<16x1xf32>
    %cst_83 = arith.constant 1.280000e+02 : f32
    %217 = vector.broadcast %cst_83 : f32 to vector<16x1xf32>
    %218 = arith.divf %216, %217 : vector<16x1xf32>
    %219 = arith.mulf %213, %213 : vector<16x1xf32>
    %220 = arith.subf %218, %219 : vector<16x1xf32>
    %cst_84 = arith.constant 0.000000e+00 : f32
    %221 = vector.broadcast %cst_84 : f32 to vector<16x1xf32>
    %222 = arith.maximumf %220, %221 : vector<16x1xf32>
    %223 = vector.broadcast %213 : vector<16x1xf32> to vector<16x128xf32>
    %224 = arith.subf %207, %223 : vector<16x128xf32>
    %cst_85 = arith.constant 9.99999974E-6 : f32
    %225 = vector.broadcast %cst_85 : f32 to vector<16x1xf32>
    %226 = arith.addf %222, %225 : vector<16x1xf32>
    %227 = math.rsqrt %226 : vector<16x1xf32>
    %228 = vector.broadcast %227 : vector<16x1xf32> to vector<16x128xf32>
    %229 = arith.mulf %224, %228 : vector<16x128xf32>
    %230 = vector.broadcast %208 : vector<1x128xf32> to vector<16x128xf32>
    %231 = arith.mulf %229, %230 : vector<16x128xf32>
    %232 = vector.broadcast %209 : vector<1x128xf32> to vector<16x128xf32>
    %233 = arith.addf %231, %232 : vector<16x128xf32>
    %c0_86 = arith.constant 0 : index
    %c896 = arith.constant 896 : index
    %234 = vector.load %arg3[%c0_86, %c896] : memref<128x1152xf32, #tpu.memory_space<vmem>>, vector<128x128xf32>
    %cst_87 = arith.constant dense<0.000000e+00> : vector<16x128xf32>
    %235 = tpu.matmul %233, %234, %cst_87 {dimension_numbers = #tpu.dot_dimension_numbers<[1], [0], [0], [1], [0, 0, 1, 1], [], []>} : vector<16x128xf32>, vector<128x128xf32>, vector<16x128xf32> -> vector<16x128xf32>
    %c11_88 = arith.constant 11 : index
    %c128_89 = arith.constant 128 : index
    %236 = vector.load %arg5[%c11_88, %c128_89] : memref<16x384xf32, #tpu.memory_space<vmem>>, vector<1x128xf32>
    %237 = vector.broadcast %236 : vector<1x128xf32> to vector<16x128xf32>
    %238 = arith.addf %235, %237 : vector<16x128xf32>
    %239 = arith.negf %238 : vector<16x128xf32>
    %240 = math.exp %239 : vector<16x128xf32>
    %cst_90 = arith.constant 1.000000e+00 : f32
    %241 = vector.broadcast %cst_90 : f32 to vector<16x128xf32>
    %242 = arith.addf %241, %240 : vector<16x128xf32>
    %243 = arith.divf %241, %242 : vector<16x128xf32>
    %c0_91 = arith.constant 0 : index
    %c0_92 = arith.constant 0 : index
    %c0_93 = arith.constant 0 : index
    %244 = vector.load %arg6[%c0_91, %c0_92, %c0_93] : memref<1x16x128xf32, #tpu.memory_space<vmem>>, vector<1x16x128xf32>
    %245 = vector.shape_cast %244 : vector<1x16x128xf32> to vector<16x128xf32>
    %246 = vector.shape_cast %243 : vector<16x128xf32> to vector<1x16x128xf32>
    tpu.vector_store %arg6[%c0_91, %c0_92, %c0_93], %246 {strides = array<i32>} : memref<1x16x128xf32, #tpu.memory_space<vmem>>, vector<1x16x128xf32>,
    return
  }
  func.func @transform_0(%arg0: i32) -> (i32, i32, i32) {
    %c0_i32 = arith.constant 0 : i32
    %c0_i32_0 = arith.constant 0 : i32
    %c0_i32_1 = arith.constant 0 : i32
    return %arg0, %c0_i32, %c0_i32_0 : i32, i32, i32
  }
  func.func @transform_1(%arg0: i32) -> (i32, i32, i32) {
    %c0_i32 = arith.constant 0 : i32
    %c0_i32_0 = arith.constant 0 : i32
    %c0_i32_1 = arith.constant 0 : i32
    %c0_i32_2 = arith.constant 0 : i32
    return %c0_i32, %c0_i32_0, %c0_i32_1 : i32, i32, i32
  }
  func.func @transform_2(%arg0: i32) -> (i32, i32) {
    %c0_i32 = arith.constant 0 : i32
    %c0_i32_0 = arith.constant 0 : i32
    %c0_i32_1 = arith.constant 0 : i32
    return %c0_i32, %c0_i32_0 : i32, i32
  }
  func.func @transform_3(%arg0: i32) -> (i32, i32) {
    %c0_i32 = arith.constant 0 : i32
    %c0_i32_0 = arith.constant 0 : i32
    %c0_i32_1 = arith.constant 0 : i32
    return %c0_i32, %c0_i32_0 : i32, i32
  }
  func.func @transform_4(%arg0: i32) -> (i32, i32) {
    %c0_i32 = arith.constant 0 : i32
    %c0_i32_0 = arith.constant 0 : i32
    %c0_i32_1 = arith.constant 0 : i32
    return %c0_i32, %c0_i32_0 : i32, i32
  }
  func.func @transform_5(%arg0: i32) -> (i32, i32, i32) {
    %c0_i32 = arith.constant 0 : i32
    %c0_i32_0 = arith.constant 0 : i32
    %c0_i32_1 = arith.constant 0 : i32
    return %arg0, %c0_i32, %c0_i32_0 : i32, i32, i32
  }
  func.func @transform_6(%arg0: i32) -> (i32, i32, i32) {
    %c0_i32 = arith.constant 0 : i32
    %c0_i32_0 = arith.constant 0 : i32
    %c0_i32_1 = arith.constant 0 : i32
    %c0_i32_2 = arith.constant 0 : i32
    return %c0_i32, %c0_i32_0, %c0_i32_1 : i32, i32, i32
  }
}

</mosaic_0001>

<bundles_post_ra>
// kernel: music_eye_forward.1
= control target key start
LH: loop header
LB: loop body
LE: loop exit
PB: predicated region body
PF: predicated region fallthrough
CT: control target
= control target key end

     0   :  { %12 = vsyncpa [#allocation4], 0  ;;  %s2693_s0 = inlined_call_operand.vmem [shape: f32[4,2,64], index: 0, kind: input, shape index: {}]   ;;  %s2694_s1 = inlined_call_operand.vmem [shape: f32[2,8,128], index: 1, kind: input, shape index: {}, may-alias: {1,6}]   ;;  %s2695_s2 = inlined_call_operand.hbm [shape: f32[128,1152], index: 2, kind: input, shape index: {}]   ;;  %s2696_s3 = inlined_call_operand.hbm [shape: f32[448,128], index: 3, kind: input, shape index: {}]   ;;  %s2697_s4 = inlined_call_operand.vmem [shape: f32[16,384], index: 4, kind: input, shape index: {}]   ;;  %s2698_s5 = inlined_call_operand.vmem [shape: f32[4,16,128], index: 5, kind: output, shape index: {0}]   ;;  %s2699_s6 = inlined_call_operand.vmem [shape: f32[2,8,128], index: 6, kind: output, shape index: {1}, may-alias: {1,6}]  }
   0x1   :  { %13 = vsyncpa [#allocation6], 0  ;;  %s2457_s21 = smov 0  }
   0x2 LB: > { %s2413_s22 = smov [#allocation3]   ;;  %s2463_s24 = sadd.s32 4294967295, %s2411_s21   ;;  %s2411_s21 = sphi %s2457_s21, %s19_s21  }
   0x3   : > { %s196_s23 = sshll.u32 %s2413_s22, 4  ;;  %p1569_p0 = scmp.ge.s32.totalorder %s2411_s21, 1  ;;  %s197_s23 = int_to_ptr.vmem [resolvable:$true] %s196_s23 }
   0x4   : > { %p181_p1 = scmp.lt.s32.totalorder %s2411_s21, 5  ;;  %p2700_p4 = scmp.eq.s32.totalorder %s2463_s24, 0 }
   0x5   : > { %s2414_s26 = smov [#allocation5]   ;;  %s2341_s7 = scalar_lea.hbm %s2695_s2, 18432 }
   0x6   : > { %p2468_p3 = pnand %p1569_p0, %p181_p1  ;;  %s209_s27 = sshll.u32 %s2414_s26, 4  ;;  %s2481_s27 = int_to_ptr.vmem [resolvable:$true] %s209_s27 }
   0x7   : > { %p2342_p7 = scmp.ne.s32.totalorder %s2695_s2, %s2341_s7  ;;  %p2348_p11 = scmp.lt.u32.totalorder %s2341_s7, %s2695_s2 }
   0x8   : > { %s2702_s25 = scalar_select %p2468_p3, 1, 0 }
   0x9   : > { %p2281_p5 = pneg %p2468_p3 }
   0xb   : > { %p2477_p6 = pnand %p2700_p4, %p2281_p5 }
   0xd   : > { %p2343_p8 = pneg %p2477_p6 }
   0xf   : > { %p2344_p9 = pnand %p2343_p8, %p2342_p7 }
  0x11   : > { %p2345_p10 = pneg %p2344_p9 }
  0x13   : > { %p2350_p12 = pnand %p2348_p11, %p2345_p10 }
  0x15   : > { %2353 = shalt.err (!%p2350_p12)
}
  0x16   : > { %s2354_s12 = scalar_lea.vmem %s197_s23, 18432  ;;  %p2362_p5 = scmp.lt.s32.totalorder %s197_s23, %s197_s23 }
  0x17   : > { %p2355_p13 = scmp.ne.s32.totalorder %s197_s23, %s2354_s12  ;;  %p2363_p2 = scmp.lt.s32.totalorder %s2354_s12, %s2354_s12 }
  0x19   : > { %p2357_p0 = pnand %p2355_p13, %p2343_p8  ;;  %p2364_p4 = por %p2363_p2, %p2362_p5 }
  0x1b   : > { %p2358_p1 = pneg %p2357_p0 }
  0x1d   : > { %p2365_p3 = pnand %p2364_p4, %p2358_p1 }
  0x1f   : > { %2368 = shalt.err (!%p2365_p3)
}
  0x20   : > { %s2415_s13 = smov 1152   ;;  %s2416_s14 = smov 72  }
  0x21   : > { %2284 = dma.hbm_to_vmem [thread:$0]  (!%p2477_p6), %s2695_s2, 18432, %s197_s23, [#allocation4], %s2415_s13, %s2415_s13, %s2416_s14  }
  0x22   : > { %s2369_s19 = scalar_lea.hbm %s2696_s3, 7168 }
  0x23   : > { %p2370_p7 = scmp.ne.s32.totalorder %s2696_s3, %s2369_s19  ;;  %p2376_p4 = scmp.lt.u32.totalorder %s2369_s19, %s2696_s3 }
  0x25   : > { %p2372_p2 = pnand %p2370_p7, %p2343_p8 }
  0x27   : > { %p2373_p3 = pneg %p2372_p2 }
  0x29   : > { %p2378_p9 = pnand %p2376_p4, %p2373_p3 }
  0x2b   : > { %2381 = shalt.err (!%p2378_p9)
}
  0x2c   : > { %s2382_s23 = scalar_lea.vmem %s2481_s27, 7168  ;;  %p2390_p13 = scmp.lt.s32.totalorder %s2481_s27, %s2481_s27 }
  0x2d   : > { %p2383_p10 = scmp.ne.s32.totalorder %s2481_s27, %s2382_s23  ;;  %p2391_p0 = scmp.lt.s32.totalorder %s2382_s23, %s2382_s23 }
  0x2f   : > { %p2385_p11 = pnand %p2383_p10, %p2343_p8  ;;  %p2392_p1 = por %p2391_p0, %p2390_p13 }
  0x31   : > { %p2386_p12 = pneg %p2385_p11 }
  0x33   : > { %p2393_p5 = pnand %p2392_p1, %p2386_p12 }
  0x35   : > { %2396 = shalt.err (!%p2393_p5)
}
  0x36   : > { %s2417_s30 = smov 128   ;;  %s2418_s7 = smov 8  }
  0x37   : > { %2287 = dma.hbm_to_vmem [thread:$0]  (!%p2477_p6), %s2696_s3, 7168, %s2481_s27, [#allocation6], %s2417_s30, %s2417_s30, %s2418_s7  }
  0x38   : > { %p2704_p7 = scmp.ne.s32.totalorder %s2702_s25, 0 }
  0x39   : > { %p2705_p8 = scmp.eq.s32.totalorder (!%p2704_p7), %s2463_s24, 0 }
  0x3a   : > { %235 = sbr.rel (%p2704_p7) target bundleno = 2638 (0xa4e), region = 40 }
  0x41   : > { %2402 = dma.done.wait (%p2705_p8), [#allocation4], 18432   ;;  %p2706_p2 = pmov %p2705_p8 }
  0x43   : > { %2404 = vsyncadd (%p2706_p2), [#allocation4], 4294948864  ;;  %p2707_p3 = pmov %p2706_p2 }
  0x44   : > { %p2708_p4 = pmov %p2706_p2 }
  0x45   : > { %2406 = dma.done.wait (%p2707_p3), [#allocation6], 7168  }
  0x46   : > { %2408 = vsyncadd (%p2708_p4), [#allocation6], 4294960128  ;;  %p268_p9 = scmp.lt.s32.totalorder %s2463_s24, 3  ;;  %p2709_p6 = scmp.ne.s32.totalorder %s2463_s24, 0 }
  0x47   : > { %v281_v0 = vld [vmem:[%s2694_s1] sm:$0xff] (!%p2709_p6)  ;;  %v282_v1 = vld [vmem:[%s2694_s1 + $0x8] sm:$0xff] (!%p2709_p6) }
  0x48   : > { %s269_s28 = scalar_select %p268_p9, %s2463_s24, 3 }
  0x49   : > { %280 = sbr.rel (%p2709_p6) target bundleno = 80 (0x50), region = 52  ;;  %283 = vst [vmem:[#allocation2] sm:$0xff] (!%p2709_p6), %v281_v0  ;;  %284 = vst [vmem:[#allocation2 + $0x8] sm:$0xff] (!%p2709_p6), %v282_v1 }
  0x4a   : > { %s1576_s27 = sshll.u32 %s269_s28, 1  ;;  %s1587_s10 = sshll.u32 %s269_s28, 4 }
  0x4b   : > { %s2545_s12 = scalar_lea.vmem %s2693_s0, %s1576_s27  ;;  %s2550_s15 = scalar_lea.vmem %s2698_s5, %s1587_s10 }
  0x50 PF: > { %v286_v2 = vld [vmem:[#allocation5] sm:$0xff]  ;;  %v287_v3 = vld [vmem:[#allocation5 + $0x8] sm:$0xff]  ;;  %v288_v4 = vld [vmem:[#allocation5 + $0x10] sm:$0xff]  ;;  %v2419_v5 = vmov 0.0|0.0   ;;  %vm2420_vm0 = vmmov 0   ;;  %v2421_v8 = vmov 0.0   ;;  %v461_v55 = vlaneseq }
  0x51   : > { %1981 = vmatprep.subr.bf16.mxu0 %v2419_v5  ;;  %v1982_v6 = vpack.c.bf16 %v287_v3, %v286_v2  ;;  %v289_v7 = vld [vmem:[#allocation5 + $0x18] sm:$0xff]  ;;  %1762 = vmatprep.mubr.msk.f32.mxu0 %vm2420_vm0, %v2421_v8  ;;  %v370_v10 = vld [vmem:[#allocation3] sm:$0xff]  ;;  %v371_v11 = vld [vmem:[#allocation3 + $0x48] sm:$0xff]  ;;  %vm295_vm1 = vcmask 523264  }
  0x52   : > { %1993 = vmatprep.subr.bf16.mxu1 %v2419_v5  ;;  %1797 = vmatprep.mubr.msk.f32.mxu1 %vm2420_vm0, %v2421_v8  ;;  %v1985_v9 = vpack.c.bf16 %v289_v7, %v288_v4  ;;  %v372_v12 = vld [vmem:[#allocation3 + $0x90] sm:$0xff]  ;;  %v290_v13 = vld [vmem:[#allocation5 + $0x20] sm:$0xff]  ;;  %v291_v14 = vld [vmem:[#allocation5 + $0x28] sm:$0xff]  ;;  %v1994_v15 = vpack.c.bf16 %v371_v11, %v370_v10  ;;  %v2567_v56 = vshrl.u32 %v461_v55, 7 }
  0x53   : > { %1983 = vmatpush3.bf16.msra.mxu0 %v1982_v6  ;;  %v373_v16 = vld [vmem:[#allocation3 + $0xd8] sm:$0xff]  ;;  %v1988_v18 = vpack.c.bf16 %v291_v14, %v290_v13  ;;  %v374_v19 = vld [vmem:[#allocation3 + $0x120] sm:$0xff]  ;;  %v375_v20 = vld [vmem:[#allocation3 + $0x168] sm:$0xff] }
  0x54   : > { %1984 = vmatprep.subr.bf16.mxu0 %v2419_v5  ;;  %1995 = vmatpush3.bf16.msra.mxu1 %v1994_v15  ;;  %v1997_v17 = vpack.c.bf16 %v373_v16, %v372_v12  ;;  %v292_v21 = vld [vmem:[#allocation5 + $0x30] sm:$0xff]  ;;  %v293_v22 = vld [vmem:[#allocation5 + $0x38] sm:$0xff]  ;;  %v2000_v23 = vpack.c.bf16 %v375_v20, %v374_v19  ;;  %v378_v29 = vld [vmem:[#allocation3 + $0x240] sm:$0xff]  ;;  %v2573_v62 = vsub.s32 0, %v2567_v56  ;;  %v2576_v63 = vsub.s32 1, %v2567_v56 }
  0x55   : > { %1996 = vmatprep.subr.bf16.mxu1 %v2419_v5  ;;  %v1991_v24 = vpack.c.bf16 %v293_v22, %v292_v21  ;;  %v376_v25 = vld [vmem:[#allocation3 + $0x1b0] sm:$0xff]  ;;  %v377_v26 = vld [vmem:[#allocation3 + $0x1f8] sm:$0xff]  ;;  %v379_v30 = vld [vmem:[#allocation3 + $0x288] sm:$0xff]  ;;  %vm469_vm2 = vcmp.eq.s32.totalorder %v2567_v56, 7 }
  0x56   : > { %v2003_v27 = vpack.c.bf16 %v377_v26, %v376_v25  ;;  %v285_v28 = vld [vmem:[%s2545_s12] sm:$0x3]  ;;  %v2006_v31 = vpack.c.bf16 %v379_v30, %v378_v29  ;;  %v381_v33 = vld [vmem:[#allocation3 + $0x318] sm:$0xff]  ;;  %v382_v35 = vld [vmem:[#allocation3 + $0x360] sm:$0xff] }
  0x57   : > { %1986 = vmatpush3.bf16.msra.mxu0 %v1985_v9  ;;  %v380_v32 = vld [vmem:[#allocation3 + $0x2d0] sm:$0xff]  ;;  %v383_v36 = vld [vmem:[#allocation3 + $0x3a8] sm:$0xff]  ;;  %v385_v39 = vld [vmem:[#allocation3 + $0x438] sm:$0xff] }
  0x58   : > { %1987 = vmatprep.subr.bf16.mxu0 %v2419_v5  ;;  %1998 = vmatpush3.bf16.msra.mxu1 %v1997_v17  ;;  %v2009_v34 = vpack.c.bf16 %v381_v33, %v380_v32  ;;  %v2012_v37 = vpack.c.bf16 %v383_v36, %v382_v35  ;;  %v384_v38 = vld [vmem:[#allocation3 + $0x3f0] sm:$0xff]  ;;  %v294_v41 = vld [vmem:[%s2697_s4 + $0x1d] ss:$0 sm:$0xff]  ;;  %v524_v47 = vld [vmem:[#allocation3 + $0x58] sm:$0xff] }
  0x59   : > { %1999 = vmatprep.subr.bf16.mxu1 %v2419_v5  ;;  %v2015_v40 = vpack.c.bf16 %v385_v39, %v384_v38  ;;  %v521_v46 = vld [vmem:[#allocation3 + $0x10] sm:$0xff]  ;;  %v520_v48 = vld [vmem:[#allocation3 + $0x8] sm:$0xff]  ;;  %v522_v51 = vld [vmem:[#allocation3 + $0x18] sm:$0xff] }
  0x5a   : > { %v2017_v49 = vpack.c.bf16 %v524_v47, %v521_v46  ;;  %v523_v50 = vld [vmem:[#allocation3 + $0x50] sm:$0xff]  ;;  %v525_v52 = vld [vmem:[#allocation3 + $0x60] sm:$0xff]  ;;  %v386_v57 = vld [vmem:[%s2697_s4 + $0x1e] ss:$0 sm:$0xff] }
  0x5b   : > { %1989 = vmatpush3.bf16.msra.mxu0 %v1988_v18  ;;  %v2019_v53 = vpack.c.bf16 %v523_v50, %v520_v48  ;;  %v2049_v54 = vpack.c.bf16 %v525_v52, %v522_v51  ;;  %v491_v59 = vld [vmem:[#allocation2 + $0x8] sm:$0xff]  ;;  %v463_v60 = vld [vmem:[#allocation2] sm:$0xff]  ;;  %v527_v14 = vld [vmem:[#allocation3 + $0xa0] sm:$0xff] }
  0x5c   : > { %1990 = vmatprep.subr.bf16.mxu0 %v2419_v5  ;;  %2001 = vmatpush3.bf16.msra.mxu1 %v2000_v23  ;;  %v492_v2 = vrot.slane %v491_v59, 1  ;;  %v464_v3 = vrot.slane %v463_v60, 1  ;;  %v458_v6 = vld [vmem:[%s2697_s4] sm:$0xff]  ;;  %v530_v15 = vld [vmem:[#allocation3 + $0xe8] sm:$0xff]  ;;  %v526_v17 = vld [vmem:[#allocation3 + $0x98] sm:$0xff] }
  0x5d   : > { %2002 = vmatprep.subr.bf16.mxu1 %v2419_v5  ;;  %v2021_v16 = vpack.c.bf16 %v530_v15, %v527_v14  ;;  %v529_v18 = vld [vmem:[#allocation3 + $0xe0] sm:$0xff]  ;;  %v528_v19 = vld [vmem:[#allocation3 + $0xa8] sm:$0xff]  ;;  %v531_v21 = vld [vmem:[#allocation3 + $0xf0] sm:$0xff] }
  0x5e   : > { %v2023_v20 = vpack.c.bf16 %v529_v18, %v526_v17  ;;  %v2053_v22 = vpack.c.bf16 %v531_v21, %v528_v19  ;;  %v533_v23 = vld [vmem:[#allocation3 + $0x130] sm:$0xff]  ;;  %v532_v26 = vld [vmem:[#allocation3 + $0x128] sm:$0xff]  ;;  %v537_v30 = vld [vmem:[#allocation3 + $0x180] sm:$0xff] }
  0x5f   : > { %1992 = vmatpush3.bf16.msra.mxu0 %v1991_v24  ;;  %v536_v24 = vld [vmem:[#allocation3 + $0x178] sm:$0xff]  ;;  %v539_v32 = vld [vmem:[#allocation3 + $0x1c0] sm:$0xff]  ;;  %v542_v33 = vld [vmem:[#allocation3 + $0x208] sm:$0xff] }
  0x60   : > { %2004 = vmatpush3.bf16.msra.mxu1 %v2003_v27  ;;  %2018 = vmatprep.subr.bf16.mxu0 %v2017_v49  ;;  %v2025_v25 = vpack.c.bf16 %v536_v24, %v533_v23  ;;  %v535_v27 = vld [vmem:[#allocation3 + $0x170] sm:$0xff]  ;;  %v538_v35 = vld [vmem:[#allocation3 + $0x1b8] sm:$0xff]  ;;  %v541_v36 = vld [vmem:[#allocation3 + $0x200] sm:$0xff] }
  0x61   : > { %2005 = vmatprep.subr.bf16.mxu1 %v2419_v5  ;;  %v2027_v29 = vpack.c.bf16 %v535_v27, %v532_v26  ;;  %v2031_v38 = vpack.c.bf16 %v541_v36, %v538_v35  ;;  %v543_v39 = vld [vmem:[#allocation3 + $0x210] sm:$0xff]  ;;  %v546_v46 = vld [vmem:[#allocation3 + $0x258] sm:$0xff]  ;;  %v549_v48 = vld [vmem:[#allocation3 + $0x2a0] sm:$0xff] }
  0x62   : > { %1763 = vmatmul.mubr.msk.f32.vlgmr.msra.gmra.mrb[0].mxu0 %vm295_vm1, %v285_v28  ;;  %v534_v28 = vld [vmem:[#allocation3 + $0x138] sm:$0xff]  ;;  %v551_v49 = vld [vmem:[#allocation3 + $0x2e0] sm:$0xff]  ;;  %v554_v50 = vld [vmem:[#allocation3 + $0x328] sm:$0xff]  ;;  %v2065_v51 = vpack.c.bf16 %v549_v48, %v546_v46 }
  0x63   : > { %650 = vmatprep.mubr.f32.mxu0 %v2421_v8  ;;  %2020 = vmatpush1.bf16.msra.mxu0 %v2019_v53  ;;  %v2037_v52 = vpack.c.bf16 %v554_v50, %v551_v49  ;;  %v550_v53 = vld [vmem:[#allocation3 + $0x2d8] sm:$0xff]  ;;  %v552_v55 = vld [vmem:[#allocation3 + $0x2e8] sm:$0xff]  ;;  %v557_v59 = vld [vmem:[#allocation3 + $0x370] sm:$0xff] }
  0x64   : > { %2007 = vmatpush3.bf16.msra.mxu1 %v2006_v31  ;;  %2022 = vmatprep.subr.bf16.mxu0 %v2021_v16  ;;  %v2057_v31 = vpack.c.bf16 %v537_v30, %v534_v28  ;;  %v560_v60 = vld [vmem:[#allocation3 + $0x3b8] sm:$0xff]  ;;  %v565_v16 = vld [vmem:[#allocation3 + $0x440] sm:$0xff]  ;;  %v744_v48 = vld [vmem:[#allocation3 + $0xd0] sm:$0xff] }
  0x65   : > { %2008 = vmatprep.subr.bf16.mxu1 %v2419_v5  ;;  %v562_v15 = vld [vmem:[#allocation3 + $0x3f8] sm:$0xff]  ;;  %v742_v19 = vld [vmem:[#allocation3 + $0x40] sm:$0xff] }
  0x66   : > { %v2047_v18 = vpack.c.bf16 %v565_v16, %v562_v15  ;;  %v745_v49 = vld [vmem:[#allocation3 + $0x118] sm:$0xff] }
  0x67   : > { %2024 = vmatpush1.bf16.msra.mxu0 %v2023_v20  ;;  %v743_v20 = vld [vmem:[#allocation3 + $0x88] sm:$0xff] }
  0x68   : > { %2010 = vmatpush3.bf16.msra.mxu1 %v2009_v34  ;;  %2026 = vmatprep.subr.bf16.mxu0 %v2025_v25  ;;  %v2029_v34 = vpack.c.bf16 %v542_v33, %v539_v32  ;;  %v2081_v21 = vpack.c.bf16 %v743_v20, %v742_v19 }
  0x69   : > { %2011 = vmatprep.subr.bf16.mxu1 %v2419_v5 }
  0x6b   : > { %2028 = vmatpush1.bf16.msra.mxu0 %v2027_v29 }
  0x6c   : > { %2013 = vmatpush3.bf16.msra.mxu1 %v2012_v37  ;;  %v540_v37 = vld [vmem:[#allocation3 + $0x1c8] sm:$0xff]  ;;  %2030 = vmatprep.subr.bf16.mxu0 %v2029_v34 }
  0x6d   : > { %2014 = vmatprep.subr.bf16.mxu1 %v2419_v5 }
  0x6f   : > { %2032 = vmatpush1.bf16.msra.mxu0 %v2031_v38 }
  0x70   : > { %2016 = vmatpush3.bf16.msra.mxu1 %v2015_v40  ;;  %v2061_v40 = vpack.c.bf16 %v543_v39, %v540_v37 }
  0x71   : > { %2050 = vmatprep.subr.bf16.mxu1 %v2049_v54 }
 0x135   : > { %v365_v42 = vpop.f32.mrb[0].mxu0 }
 0x136   : > { %v366_v43 = vadd.f32 %v365_v42, %v294_v41  ;;  %v1764_v44 = vpop.f32.mrb[1].mxu0  ;;  %v545_v41 = vld [vmem:[#allocation3 + $0x250] sm:$0xff]  ;;  %v548_v42 = vld [vmem:[#allocation3 + $0x298] sm:$0xff] }
 0x137   : > { %v544_v44 = vld [vmem:[#allocation3 + $0x248] sm:$0xff] }
 0x138   : > { %v369_v45 = vmax.f32 %v366_v43, 0.0  ;;  %v2033_v43 = vpack.c.bf16 %v548_v42, %v545_v41  ;;  %v459_v41 = vld [vmem:[%s2697_s4 + $0x18] ss:$0 sm:$0xff] }
 0x13a   : > { %1798 = vmatmul.mubr.f32.vlgmr.msra.gmra.mrb[0].mxu1 %v369_v45  ;;  %v547_v45 = vld [vmem:[#allocation3 + $0x290] sm:$0xff]  ;;  %2034 = vmatprep.subr.bf16.mxu0 %v2033_v43 }
 0x13b   : > { %2052 = vmatpush3.bf16.msra.mxu1 %v2049_v54  ;;  %v2035_v47 = vpack.c.bf16 %v547_v45, %v544_v44  ;;  %v553_v54 = vld [vmem:[#allocation3 + $0x320] sm:$0xff]  ;;  %v460_v44 = vld [vmem:[%s2697_s4 + $0x19] ss:$0 sm:$0xff] }
 0x13c   : > { %2054 = vmatprep.subr.bf16.mxu1 %v2053_v22 }
 0x13d   : > { %2036 = vmatpush1.bf16.msra.mxu0 %v2035_v47 }
 0x13e   : > { %2038 = vmatprep.subr.bf16.mxu0 %v2037_v52  ;;  %v747_v52 = vld [vmem:[#allocation3 + $0x1a8] sm:$0xff] }
 0x13f   : > { %2056 = vmatpush3.bf16.msra.mxu1 %v2053_v22 }
 0x140   : > { %2058 = vmatprep.subr.bf16.mxu1 %v2057_v31 }
 0x143   : > { %2060 = vmatpush3.bf16.msra.mxu1 %v2057_v31 }
 0x144   : > { %2062 = vmatprep.subr.bf16.mxu1 %v2061_v40 }
 0x147   : > { %2064 = vmatpush3.bf16.msra.mxu1 %v2061_v40 }
 0x148   : > { %2066 = vmatprep.subr.bf16.mxu1 %v2065_v51 }
 0x14b   : > { %2068 = vmatpush3.bf16.msra.mxu1 %v2065_v51  ;;  %v746_v51 = vld [vmem:[#allocation3 + $0x160] sm:$0xff] }
 0x20d   : > { %v453_v58 = vpop.f32.mrb[0].mxu1 }
 0x20e   : > { %v454_v61 = vadd.f32 %v453_v58, %v386_v57  ;;  %v1799_v0 = vpop.f32.mrb[1].mxu1  ;;  %v2039_v57 = vpack.c.bf16 %v553_v54, %v550_v53  ;;  %v555_v58 = vld [vmem:[#allocation3 + $0x330] sm:$0xff]  ;;  %v2089_v53 = vpack.c.bf16 %v747_v52, %v746_v51  ;;  %v976_v52 = vld [vmem:[#allocation3 + $0x20] sm:$0xff] }
 0x20f   : > { %v2041_v0 = vpack.c.bf16 %v560_v60, %v557_v59  ;;  %v748_v54 = vld [vmem:[#allocation3 + $0x1f0] sm:$0xff]  ;;  %v751_v59 = vld [vmem:[#allocation3 + $0x2c8] sm:$0xff] }
 0x210   : > { %v457_v1 = vmax.f32 %v454_v61, 0.0  ;;  %v2069_v61 = vpack.c.bf16 %v555_v58, %v552_v55  ;;  %2040 = vmatpush1.bf16.msra.mxu0 %v2039_v57  ;;  %v749_v55 = vld [vmem:[#allocation3 + $0x238] sm:$0xff]  ;;  %v750_v58 = vld [vmem:[#allocation3 + $0x280] sm:$0xff] }
 0x211   : > { %2042 = vmatprep.subr.bf16.mxu0 %v2041_v0  ;;  %v2093_v57 = vpack.c.bf16 %v749_v55, %v748_v54  ;;  %v2097_v60 = vpack.c.bf16 %v751_v59, %v750_v58  ;;  %v753_v0 = vld [vmem:[#allocation3 + $0x358] sm:$0xff]  ;;  %v978_v54 = vld [vmem:[#allocation3 + $0xb0] sm:$0xff]  ;;  %v980_v59 = vld [vmem:[#allocation3 + $0x140] sm:$0xff] }
 0x212   : > { %v468_v4 = vrot.slane %v457_v1, %v2573_v62  ;;  %v496_v5 = vrot.slane %v457_v1, %v2576_v63  ;;  %v556_v1 = vld [vmem:[#allocation3 + $0x368] sm:$0xff]  ;;  %2070 = vmatprep.subr.bf16.mxu1 %v2069_v61 }
 0x213   : > { %2072 = vmatpush3.bf16.msra.mxu1 %v2069_v61  ;;  %v752_v61 = vld [vmem:[#allocation3 + $0x310] sm:$0xff] }
 0x214   : > { %v497_v7 = vsel %vm469_vm2, %v496_v5, %v492_v2  ;;  %v470_v9 = vsel %vm469_vm2, %v468_v4, %v464_v3  ;;  %v559_v2 = vld [vmem:[#allocation3 + $0x3b0] sm:$0xff]  ;;  %v558_v3 = vld [vmem:[#allocation3 + $0x378] sm:$0xff]  ;;  %v561_v4 = vld [vmem:[#allocation3 + $0x3c0] sm:$0xff] }
 0x215   : > { %v2584_v10 = vadd.f32 %v497_v7, %v458_v6  ;;  %498 = vst [vmem:[#allocation2 + $0x8] sm:$0xff] %v497_v7  ;;  %519 = vst [vmem:[%s2699_s6 + $0x8] sm:$0xff] %v497_v7  ;;  %v2589_v11 = vadd.f32 %v470_v9, %v458_v6  ;;  %v563_v5 = vld [vmem:[#allocation3 + $0x400] sm:$0xff]  ;;  %v566_v6 = vld [vmem:[#allocation3 + $0x448] sm:$0xff]  ;;  %v2073_v7 = vpack.c.bf16 %v561_v4, %v558_v3 }
 0x216   : > { %471 = vst [vmem:[#allocation2] sm:$0xff] %v470_v9  ;;  %518 = vst [vmem:[%s2699_s6] sm:$0xff] %v470_v9  ;;  %v2043_v9 = vpack.c.bf16 %v559_v2, %v556_v1  ;;  %v2045_v14 = vpack.c.bf16 %v566_v6, %v563_v5  ;;  %v2101_v1 = vpack.c.bf16 %v753_v0, %v752_v61  ;;  %v754_v2 = vld [vmem:[#allocation3 + $0x3a0] sm:$0xff]  ;;  %v755_v3 = vld [vmem:[#allocation3 + $0x3e8] sm:$0xff] }
 0x217   : > { %500 = vadd.xlane.f32.xlu1 %v2584_v10  ;;  %473 = vadd.xlane.f32.xlu0 %v2589_v11  ;;  %v503_v12 = vmul.f32 %v2584_v10, %v2584_v10  ;;  %v477_v13 = vmul.f32 %v2589_v11, %v2589_v11  ;;  %v2105_v4 = vpack.c.bf16 %v755_v3, %v754_v2  ;;  %v756_v5 = vld [vmem:[#allocation3 + $0x430] sm:$0xff]  ;;  %v757_v6 = vld [vmem:[#allocation3 + $0x478] sm:$0xff]  ;;  %v984_v3 = vld [vmem:[#allocation3 + $0x260] sm:$0xff] }
 0x218   : > { %2074 = vmatprep.subr.bf16.mxu1 %v2073_v7  ;;  %2044 = vmatpush1.bf16.msra.mxu0 %v2043_v9  ;;  %v2620_v9 = vld [vmem:[%s2697_s4 + $0x1a] ss:$8 sm:$0x7] }
 0x219   : > { %2046 = vmatprep.subr.bf16.mxu0 %v2045_v14  ;;  %2076 = vmatpush3.bf16.msra.mxu1 %v2073_v7  ;;  %v2109_v7 = vpack.c.bf16 %v757_v6, %v756_v5  ;;  %v982_v0 = vld [vmem:[#allocation3 + $0x1d0] sm:$0xff] }
 0x21a   : > { %v986_v6 = vld [vmem:[#allocation3 + $0x2f0] sm:$0xff] }
 0x21b   : > { %504 = vadd.xlane.f32.xlu1 %v503_v12  ;;  %478 = vadd.xlane.f32.xlu0 %v477_v13  ;;  %v564_v12 = vld [vmem:[#allocation3 + $0x408] sm:$0xff]  ;;  %v567_v13 = vld [vmem:[#allocation3 + $0x450] sm:$0xff] }
 0x21c   : > { %v2077_v17 = vpack.c.bf16 %v567_v13, %v564_v12  ;;  %2048 = vmatpush1.bf16.msra.mxu0 %v2047_v18  ;;  %v574_v12 = vrot.slane %v2620_v9, %v2573_v62  ;;  %v578_v13 = vrot.slane %v2620_v9, %v2576_v63 }
 0x21d   : > { %2082 = vmatprep.subr.bf16.mxu0 %v2081_v21 }
 0x21e   : > { %2078 = vmatprep.subr.bf16.mxu1 %v2077_v17 }
 0x21f   : > { %2080 = vmatpush3.bf16.msra.mxu1 %v2077_v17 }
 0x2a4   : > { %v501_v22 = vpop.xlane.xlu1 %500  ;;  %v474_v23 = vpop.xlane.xlu0 %473 }
 0x2a5   : > { %v502_v24 = vmul.f32 0.0078125, %v501_v22  ;;  %v476_v25 = vmul.f32 0.0078125, %v474_v23 }
 0x2a7   : > { %v507_v28 = vmul.f32 %v502_v24, %v502_v24  ;;  %v481_v29 = vmul.f32 %v476_v25, %v476_v25  ;;  %v510_v38 = vsub.f32 %v2584_v10, %v502_v24  ;;  %v484_v40 = vsub.f32 %v2589_v11, %v476_v25 }
 0x2a8   : > { %v505_v26 = vpop.xlane.xlu1 %504  ;;  %v479_v27 = vpop.xlane.xlu0 %478  ;;  %v2085_v11 = vpack.c.bf16 %v745_v49, %v744_v48  ;;  %v883_v48 = vld [vmem:[#allocation5 + $0x1b0] sm:$0xff] }
 0x2a9   : > { %v506_v30 = vmul.f32 0.0078125, %v505_v26  ;;  %v480_v31 = vmul.f32 0.0078125, %v479_v27 }
 0x2ab   : > { %v508_v32 = vsub.f32 %v506_v30, %v507_v28  ;;  %v482_v33 = vsub.f32 %v480_v31, %v481_v29  ;;  %v869_v28 = vld [vmem:[#allocation5 + $0x140] sm:$0xff]  ;;  %v870_v29 = vld [vmem:[#allocation5 + $0x148] sm:$0xff]  ;;  %v871_v31 = vld [vmem:[#allocation5 + $0x150] sm:$0xff] }
 0x2ac   : > { %v2113_v30 = vpack.c.bf16 %v870_v29, %v869_v28 }
 0x2ad   : > { %v509_v34 = vmax.f32 %v508_v32, 0.0  ;;  %v483_v35 = vmax.f32 %v482_v33, 0.0  ;;  %v872_v32 = vld [vmem:[#allocation5 + $0x158] sm:$0xff] }
 0x2ae   : > { %2114 = vmatprep.subr.bf16.mxu1 %v2113_v30  ;;  %v2117_v33 = vpack.c.bf16 %v872_v32, %v871_v31 }
 0x2af   : > { %v511_v36 = vadd.f32 1e-05, %v509_v34  ;;  %v485_v37 = vadd.f32 1e-05, %v483_v35  ;;  %v873_v34 = vld [vmem:[#allocation5 + $0x160] sm:$0xff]  ;;  %v874_v35 = vld [vmem:[#allocation5 + $0x168] sm:$0xff] }
 0x2b1   : > { %2309 = vrsqrt.f32 %v511_v36  ;;  %v2121_v36 = vpack.c.bf16 %v874_v35, %v873_v34 }
 0x2b2   : > { %2311 = vrsqrt.f32 %v485_v37  ;;  %v875_v37 = vld [vmem:[#allocation5 + $0x170] sm:$0xff] }
 0x2bb   : > { %v2310_v39 = vpop.eup %2309 }
 0x2bc   : > { %v2312_v42 = vpop.eup %2311  ;;  %v513_v43 = vmul.f32 %v2310_v39, %v510_v38  ;;  %v876_v38 = vld [vmem:[#allocation5 + $0x178] sm:$0xff] }
 0x2bd   : > { %v487_v45 = vmul.f32 %v2312_v42, %v484_v40  ;;  %v2125_v39 = vpack.c.bf16 %v876_v38, %v875_v37  ;;  %v877_v40 = vld [vmem:[#allocation5 + $0x180] sm:$0xff] }
 0x2be   : > { %v514_v46 = vmul.f32 %v513_v43, %v459_v41  ;;  %v879_v43 = vld [vmem:[#allocation5 + $0x190] sm:$0xff] }
 0x2bf   : > { %v488_v47 = vmul.f32 %v487_v45, %v459_v41  ;;  %v878_v41 = vld [vmem:[#allocation5 + $0x188] sm:$0xff] }
 0x2c0   : > { %v2608_v50 = vadd.f32 %v514_v46, %v460_v44  ;;  %v2129_v42 = vpack.c.bf16 %v878_v41, %v877_v40  ;;  %v881_v46 = vld [vmem:[#allocation5 + $0x1a0] sm:$0xff] }
 0x2c1   : > { %v2610_v10 = vadd.f32 %v488_v47, %v460_v44  ;;  %v880_v44 = vld [vmem:[#allocation5 + $0x198] sm:$0xff]  ;;  %v882_v47 = vld [vmem:[#allocation5 + $0x1a8] sm:$0xff] }
 0x2c2   : > { %v2133_v45 = vpack.c.bf16 %v880_v44, %v879_v43  ;;  %v2137_v49 = vpack.c.bf16 %v882_v47, %v881_v46  ;;  %v989_v46 = vld [vmem:[#allocation3 + $0x3c8] sm:$0xff] }
 0x2c3   : > { %651 = vmatmul.mubr.f32.vlgmr.msra.gmra.mrb[2].mxu0 %v2610_v10  ;;  %1832 = vmatprep.mubr.f32.mxu1 %v2610_v10 }
 0x2c4   : > { %1833 = vmatmul.mubr.f32.vlgmr.msra.gmra.mrb[2].mxu1 %v2608_v50  ;;  %656 = vmatprep.mubr.f32.mxu0 %v2421_v8 }
 0x2c5   : > { %2084 = vmatpush3.bf16.msra.mxu0 %v2081_v21  ;;  %2116 = vmatpush3.bf16.msra.mxu1 %v2113_v30 }
 0x2c6   : > { %2086 = vmatprep.subr.bf16.mxu0 %v2085_v11  ;;  %2118 = vmatprep.subr.bf16.mxu1 %v2117_v33 }
 0x2c7   : > { %657 = vmatmul.mubr.f32.gmra.mrb[4].mxu0 %v2608_v50 }
 0x2c9   : > { %2088 = vmatpush3.bf16.msra.mxu0 %v2085_v11  ;;  %2120 = vmatpush3.bf16.msra.mxu1 %v2117_v33  ;;  %v884_v11 = vld [vmem:[#allocation5 + $0x1b8] sm:$0xff] }
 0x2ca   : > { %2090 = vmatprep.subr.bf16.mxu0 %v2089_v53  ;;  %2122 = vmatprep.subr.bf16.mxu1 %v2121_v36  ;;  %v2141_v51 = vpack.c.bf16 %v884_v11, %v883_v48  ;;  %v990_v48 = vld [vmem:[#allocation3 + $0x410] sm:$0xff] }
 0x2cd   : > { %2092 = vmatpush3.bf16.msra.mxu0 %v2089_v53  ;;  %2124 = vmatpush3.bf16.msra.mxu1 %v2121_v36  ;;  %v977_v53 = vld [vmem:[#allocation3 + $0x68] sm:$0xff] }
 0x2ce   : > { %2094 = vmatprep.subr.bf16.mxu0 %v2093_v57  ;;  %2126 = vmatprep.subr.bf16.mxu1 %v2125_v39  ;;  %v2145_v55 = vpack.c.bf16 %v977_v53, %v976_v52 }
 0x2d1   : > { %2096 = vmatpush3.bf16.msra.mxu0 %v2093_v57  ;;  %2128 = vmatpush3.bf16.msra.mxu1 %v2125_v39  ;;  %v979_v57 = vld [vmem:[#allocation3 + $0xf8] sm:$0xff] }
 0x2d2   : > { %2098 = vmatprep.subr.bf16.mxu0 %v2097_v60  ;;  %2130 = vmatprep.subr.bf16.mxu1 %v2129_v42  ;;  %v2149_v58 = vpack.c.bf16 %v979_v57, %v978_v54 }
 0x2d5   : > { %2100 = vmatpush3.bf16.msra.mxu0 %v2097_v60  ;;  %2132 = vmatpush3.bf16.msra.mxu1 %v2129_v42  ;;  %v981_v60 = vld [vmem:[#allocation3 + $0x188] sm:$0xff] }
 0x2d6   : > { %2102 = vmatprep.subr.bf16.mxu0 %v2101_v1  ;;  %2134 = vmatprep.subr.bf16.mxu1 %v2133_v45  ;;  %v2153_v61 = vpack.c.bf16 %v981_v60, %v980_v59 }
 0x2d9   : > { %2104 = vmatpush3.bf16.msra.mxu0 %v2101_v1  ;;  %2136 = vmatpush3.bf16.msra.mxu1 %v2133_v45  ;;  %v983_v1 = vld [vmem:[#allocation3 + $0x218] sm:$0xff]  ;;  %v988_v45 = vld [vmem:[#allocation3 + $0x380] sm:$0xff] }
 0x2da   : > { %2106 = vmatprep.subr.bf16.mxu0 %v2105_v4  ;;  %2138 = vmatprep.subr.bf16.mxu1 %v2137_v49  ;;  %v2157_v2 = vpack.c.bf16 %v983_v1, %v982_v0  ;;  %v2169_v47 = vpack.c.bf16 %v989_v46, %v988_v45  ;;  %v1126_v46 = vld [vmem:[#allocation3 + $0x2f8] sm:$0xff] }
 0x2dd   : > { %2108 = vmatpush3.bf16.msra.mxu0 %v2105_v4  ;;  %2140 = vmatpush3.bf16.msra.mxu1 %v2137_v49  ;;  %v985_v4 = vld [vmem:[#allocation3 + $0x2a8] sm:$0xff]  ;;  %v991_v49 = vld [vmem:[#allocation3 + $0x458] sm:$0xff] }
 0x2de   : > { %2110 = vmatprep.subr.bf16.mxu0 %v2109_v7  ;;  %2142 = vmatprep.subr.bf16.mxu1 %v2141_v51  ;;  %v2161_v5 = vpack.c.bf16 %v985_v4, %v984_v3  ;;  %v2173_v11 = vpack.c.bf16 %v991_v49, %v990_v48  ;;  %v1107_v4 = vld [vmem:[#allocation3 + $0x30] sm:$0xff] }
 0x2df   : > { %v1131_v49 = vld [vmem:[#allocation3 + $0x390] sm:$0xff] }
 0x2e1   : > { %2112 = vmatpush3.bf16.msra.mxu0 %v2109_v7  ;;  %2144 = vmatpush3.bf16.msra.mxu1 %v2141_v51  ;;  %v987_v7 = vld [vmem:[#allocation3 + $0x338] sm:$0xff]  ;;  %v581_v51 = vsub.s32 2, %v2567_v56 }
 0x2e2   : > { %2146 = vmatprep.subr.bf16.mxu0 %v2145_v55  ;;  %v1109_v56 = vld [vmem:[#allocation3 + $0x78] sm:$0xff] }
 0x2e3   : > { %v582_v52 = vrot.slane %v2620_v9, %v581_v51  ;;  %v2177_v9 = vpack.c.bf16 %v1109_v56, %v1107_v4  ;;  %v1233_v4 = vld [vmem:[#allocation5 + $0x48] sm:$0xff]  ;;  %v1250_v56 = vld [vmem:[#allocation5 + $0xd0] sm:$0xff] }
 0x2e5   : > { %2178 = vmatprep.subr.bf16.mxu1 %v2177_v9 }
 0x396   : > { %v652_v14 = vpop.f32.mrb[2].mxu0 }
 0x397   : > { %v653_v15 = vadd.f32 %v652_v14, %v574_v12  ;;  %v654_v16 = vpop.f32.mrb[3].mxu0  ;;  %v2626_v17 = vpop.f32.mrb[2].mxu1 }
 0x398   : > { %v655_v18 = vadd.f32 %v654_v16, %v578_v13  ;;  %v2628_v19 = vpop.f32.mrb[3].mxu1  ;;  %v735_v53 = vadd.f32 %v2626_v17, %v582_v52  ;;  %v1111_v17 = vld [vmem:[#allocation3 + $0xc0] sm:$0xff] }
 0x399   : > { %v730_v54 = vadd.f32 %v2628_v19, %v582_v52  ;;  %v1130_v52 = vld [vmem:[#allocation3 + $0x388] sm:$0xff] }
 0x39a   : > { %v738_v20 = vmul.f32 %v655_v18, %v653_v15  ;;  %v658_v21 = vpop.f32.mrb[4].mxu0 }
 0x39b   : > { %v659_v22 = vadd.f32 %v658_v21, %v574_v12  ;;  %v660_v23 = vpop.f32.mrb[5].mxu0  ;;  %v2165_v12 = vpack.c.bf16 %v987_v7, %v986_v6  ;;  %v1108_v6 = vld [vmem:[#allocation3 + $0x70] sm:$0xff]  ;;  %v1113_v7 = vld [vmem:[#allocation3 + $0x108] sm:$0xff] }
 0x39c   : > { %v661_v24 = vadd.f32 %v660_v23, %v578_v13  ;;  %1867 = vmatprep.mubr.f32.mxu0 %v738_v20 }
 0x39d   : > { %v740_v25 = vmul.f32 %v659_v22, %v655_v18 }
 0x39e   : > { %v739_v26 = vmul.f32 %v661_v24, %v653_v15  ;;  %v741_v27 = vmul.f32 %v661_v24, %v659_v22 }
 0x3a0   : > { %1868 = vmatmul.mubr.f32.vlgmr.msra.gmra.mrb[6].mxu0 %v739_v26 }
 0x3a1   : > { %1870 = vmatprep.mubr.f32.mxu0 %v740_v25  ;;  %2148 = vmatpush3.bf16.msra.mxu0 %v2145_v55 }
 0x3a2   : > { %2150 = vmatprep.subr.bf16.mxu0 %v2149_v58 }
 0x3a4   : > { %1871 = vmatmul.mubr.f32.gmra.mrb[8].mxu0 %v741_v27 }
 0x3a5   : > { %2152 = vmatpush3.bf16.msra.mxu0 %v2149_v58 }
 0x3a6   : > { %2154 = vmatprep.subr.bf16.mxu0 %v2153_v61 }
 0x3a9   : > { %2156 = vmatpush3.bf16.msra.mxu0 %v2153_v61 }
 0x3aa   : > { %2158 = vmatprep.subr.bf16.mxu0 %v2157_v2 }
 0x3ad   : > { %2160 = vmatpush3.bf16.msra.mxu0 %v2157_v2 }
 0x3ae   : > { %2162 = vmatprep.subr.bf16.mxu0 %v2161_v5 }
 0x3b1   : > { %2164 = vmatpush3.bf16.msra.mxu0 %v2161_v5  ;;  %v1106_v5 = vld [vmem:[#allocation3 + $0x28] sm:$0xff] }
 0x3b2   : > { %2166 = vmatprep.subr.bf16.mxu0 %v2165_v12  ;;  %v2179_v19 = vpack.c.bf16 %v1108_v6, %v1106_v5  ;;  %v1251_v5 = vld [vmem:[#allocation5 + $0xd8] sm:$0xff] }
 0x3b3   : > { %v2213_v6 = vpack.c.bf16 %v1251_v5, %v1250_v56 }
 0x3b5   : > { %2168 = vmatpush3.bf16.msra.mxu0 %v2165_v12  ;;  %v2181_v12 = vpack.c.bf16 %v1113_v7, %v1111_v17  ;;  %v1234_v17 = vld [vmem:[#allocation5 + $0x50] sm:$0xff]  ;;  %v1235_v7 = vld [vmem:[#allocation5 + $0x58] sm:$0xff] }
 0x3b6   : > { %2170 = vmatprep.subr.bf16.mxu0 %v2169_v47 }
 0x3b9   : > { %2172 = vmatpush3.bf16.msra.mxu0 %v2169_v47  ;;  %v1128_v47 = vld [vmem:[#allocation3 + $0x340] sm:$0xff] }
 0x3ba   : > { %2174 = vmatprep.subr.bf16.mxu0 %v2173_v11  ;;  %v2199_v48 = vpack.c.bf16 %v1128_v47, %v1126_v46 }
 0x3bd   : > { %2176 = vmatpush3.bf16.msra.mxu0 %v2173_v11  ;;  %v1133_v11 = vld [vmem:[#allocation3 + $0x3d8] sm:$0xff] }
 0x3be   : > { %v2201_v51 = vpack.c.bf16 %v1133_v11, %v1131_v49 }
 0x473   : > { %v1869_v13 = vpop.f32.mrb[6].mxu0 }
 0x474   : > { %v844_v14 = vmul.f32 0.17677669, %v1869_v13  ;;  %v824_v15 = vpop.f32.mrb[7].mxu0 }
 0x475   : > { %v843_v16 = vmul.f32 0.17677669, %v824_v15 }
 0x477   : > { %v847_v18 = vmax.f32 %v843_v16, %v844_v14  ;;  %v1872_v20 = vpop.f32.mrb[8].mxu0 }
 0x478   : > { %v846_v21 = vmul.f32 0.17677669, %v1872_v20  ;;  %v834_v22 = vpop.f32.mrb[9].mxu0 }
 0x479   : > { %v848_v23 = vsub.f32 %v843_v16, %v847_v18  ;;  %v851_v24 = vsub.f32 %v844_v14, %v847_v18  ;;  %v845_v25 = vmul.f32 0.17677669, %v834_v22  ;;  %v1069_v14 = vld [vmem:[%s2697_s4 + $0x1b] ss:$0 sm:$0xff] }
 0x47b   : > { %v849_v26 = vmul.f32 1.442695, %v848_v23  ;;  %v852_v27 = vmul.f32 1.442695, %v851_v24  ;;  %v858_v28 = vmax.f32 %v845_v25, %v846_v21  ;;  %v1110_v24 = vld [vmem:[#allocation3 + $0xb8] sm:$0xff] }
 0x47d   : > { %2313 = vpow2.f32 %v849_v26  ;;  %v859_v29 = vsub.f32 %v845_v25, %v858_v28  ;;  %v862_v30 = vsub.f32 %v846_v21, %v858_v28  ;;  %v1117_v26 = vld [vmem:[#allocation3 + $0x198] sm:$0xff]  ;;  %v1114_v28 = vld [vmem:[#allocation3 + $0x148] sm:$0xff] }
 0x47e   : > { %2315 = vpow2.f32 %v852_v27 }
 0x47f   : > { %v860_v31 = vmul.f32 1.442695, %v859_v29  ;;  %v863_v32 = vmul.f32 1.442695, %v862_v30  ;;  %v1116_v29 = vld [vmem:[#allocation3 + $0x190] sm:$0xff] }
 0x480   : > { %v2187_v30 = vpack.c.bf16 %v1116_v29, %v1114_v28  ;;  %v1240_v29 = vld [vmem:[#allocation5 + $0x80] sm:$0xff] }
 0x481   : > { %2317 = vpow2.f32 %v860_v31  ;;  %v1119_v31 = vld [vmem:[#allocation3 + $0x1e0] sm:$0xff] }
 0x482   : > { %2319 = vpow2.f32 %v863_v32  ;;  %v1121_v32 = vld [vmem:[#allocation3 + $0x228] sm:$0xff] }
 0x487   : > { %v2314_v33 = vpop.eup %2313 }
 0x488   : > { %v2316_v34 = vpop.eup %2315 }
 0x489   : > { %v854_v35 = vadd.f32 %v2316_v34, %v2314_v33 }
 0x48b   : > { %v2318_v36 = vpop.eup %2317  ;;  %2321 = vrcp.f32 %v854_v35  ;;  %v1120_v35 = vld [vmem:[#allocation3 + $0x220] sm:$0xff] }
 0x48c   : > { %v2320_v37 = vpop.eup %2319 }
 0x48d   : > { %v865_v38 = vadd.f32 %v2320_v37, %v2318_v36 }
 0x48f   : > { %2323 = vrcp.f32 %v865_v38  ;;  %v1125_v38 = vld [vmem:[#allocation3 + $0x2b8] sm:$0xff] }
 0x495   : > { %v2322_v39 = vpop.eup %2321 }
 0x496   : > { %v856_v40 = vmul.f32 %v2322_v39, %v2314_v33  ;;  %v857_v41 = vmul.f32 %v2322_v39, %v2316_v34  ;;  %v2189_v33 = vpack.c.bf16 %v1121_v32, %v1119_v31  ;;  %v1118_v34 = vld [vmem:[#allocation3 + $0x1d8] sm:$0xff]  ;;  %v1258_v31 = vld [vmem:[#allocation5 + $0x110] sm:$0xff] }
 0x497   : > { %v1259_v32 = vld [vmem:[#allocation5 + $0x118] sm:$0xff] }
 0x498   : > { %1905 = vmatprep.mubr.f32.mxu1 %v856_v40  ;;  %v1122_v40 = vld [vmem:[#allocation3 + $0x268] sm:$0xff] }
 0x499   : > { %v2324_v42 = vpop.eup %2323  ;;  %1906 = vmatmul.mubr.f32.vlgmr.msra.gmra.mrb[4].mxu1 %v857_v41  ;;  %v1124_v41 = vld [vmem:[#allocation3 + $0x2b0] sm:$0xff] }
 0x49a   : > { %v867_v43 = vmul.f32 %v2324_v42, %v2318_v36  ;;  %v868_v44 = vmul.f32 %v2324_v42, %v2320_v37  ;;  %2180 = vmatpush1.bf16.msra.mxu1 %v2179_v19  ;;  %v2191_v36 = vpack.c.bf16 %v1120_v35, %v1118_v34  ;;  %v1123_v37 = vld [vmem:[#allocation3 + $0x270] sm:$0xff]  ;;  %v2195_v42 = vpack.c.bf16 %v1124_v41, %v1122_v40  ;;  %v1252_v19 = vld [vmem:[#allocation5 + $0xe0] sm:$0xff] }
 0x49b   : > { %2182 = vmatprep.subr.bf16.mxu1 %v2181_v12  ;;  %v2193_v39 = vpack.c.bf16 %v1125_v38, %v1123_v37  ;;  %v1253_v12 = vld [vmem:[#allocation5 + $0xe8] sm:$0xff]  ;;  %v2229_v34 = vpack.c.bf16 %v1259_v32, %v1258_v31  ;;  %v1242_v35 = vld [vmem:[#allocation5 + $0x90] sm:$0xff]  ;;  %v1260_v37 = vld [vmem:[#allocation5 + $0x120] sm:$0xff] }
 0x49c   : > { %1908 = vmatprep.mubr.f32.mxu1 %v867_v43  ;;  %v1127_v43 = vld [vmem:[#allocation3 + $0x300] sm:$0xff]  ;;  %v1261_v38 = vld [vmem:[#allocation5 + $0x128] sm:$0xff] }
 0x49d   : > { %1909 = vmatmul.mubr.f32.gmra.mrb[6].mxu1 %v868_v44  ;;  %v1129_v44 = vld [vmem:[#allocation3 + $0x348] sm:$0xff]  ;;  %v2233_v40 = vpack.c.bf16 %v1261_v38, %v1260_v37 }
 0x49e   : > { %1215 = vmatprep.mubr.f32.mxu1 %v2421_v8  ;;  %v2197_v45 = vpack.c.bf16 %v1129_v44, %v1127_v43 }
 0x56c   : > { %v1907_v55 = vpop.f32.mrb[4].mxu1 }
 0x56d   : > { %v971_v57 = vmul.f32 %v1907_v55, %v735_v53  ;;  %v951_v58 = vpop.f32.mrb[5].mxu1  ;;  %v1135_v55 = vld [vmem:[#allocation3 + $0x420] sm:$0xff] }
 0x56e   : > { %v970_v59 = vmul.f32 %v951_v58, %v730_v54 }
 0x570   : > { %v972_v60 = vadd.f32 %v971_v57, %v970_v59  ;;  %v1910_v61 = vpop.f32.mrb[6].mxu1  ;;  %v1137_v57 = vld [vmem:[#allocation3 + $0x468] sm:$0xff]  ;;  %v1134_v59 = vld [vmem:[#allocation3 + $0x418] sm:$0xff] }
 0x571   : > { %v974_v0 = vmul.f32 %v1910_v61, %v735_v53  ;;  %v961_v1 = vpop.f32.mrb[7].mxu1  ;;  %v1132_v53 = vld [vmem:[#allocation3 + $0x3d0] sm:$0xff]  ;;  %v2205_v58 = vpack.c.bf16 %v1137_v57, %v1135_v55 }
 0x572   : > { %v973_v2 = vmul.f32 %v961_v1, %v730_v54  ;;  %1943 = vmatprep.mubr.f32.mxu0 %v972_v60  ;;  %v2203_v54 = vpack.c.bf16 %v1132_v53, %v1130_v52  ;;  %v1136_v60 = vld [vmem:[#allocation3 + $0x460] sm:$0xff]  ;;  %v1249_v1 = vld [vmem:[#allocation5 + $0xc8] sm:$0xff] }
 0x573   : > { %v2207_v61 = vpack.c.bf16 %v1136_v60, %v1134_v59  ;;  %v1072_v60 = vld [vmem:[%s2697_s4 + $0x20] ss:$0 sm:$0xff] }
 0x574   : > { %v975_v3 = vadd.f32 %v974_v0, %v973_v2  ;;  %v1248_v0 = vld [vmem:[#allocation5 + $0xc0] sm:$0xff] }
 0x575   : > { %v1232_v2 = vld [vmem:[#allocation5 + $0x40] sm:$0xff] }
 0x576   : > { %1944 = vmatmul.mubr.f32.vlgmr.msra.gmra.mrb[10].mxu0 %v975_v3  ;;  %v2209_v3 = vpack.c.bf16 %v1249_v1, %v1248_v0  ;;  %v2211_v9 = vpack.c.bf16 %v1233_v4, %v1232_v2  ;;  %v1073_v0 = vld [vmem:[%s2697_s4 + $0x21] ss:$0 sm:$0xff] }
 0x578   : > { %2210 = vmatprep.subr.bf16.mxu0 %v2209_v3 }
 0x579   : > { %2212 = vmatpush3.bf16.msra.mxu0 %v2211_v9  ;;  %v1244_v9 = vld [vmem:[#allocation5 + $0xa0] sm:$0xff] }
 0x57a   : > { %2214 = vmatprep.subr.bf16.mxu0 %v2213_v6  ;;  %v1245_v6 = vld [vmem:[#allocation5 + $0xa8] sm:$0xff] }
 0x649   : > { %v1945_v13 = vpop.f32.mrb[10].mxu0 }
 0x64a   : > { %v1058_v15 = vpop.f32.mrb[11].mxu0  ;;  %v1068_v16 = vadd.f32 %v1945_v13, %v2608_v50  ;;  %v1112_v50 = vld [vmem:[#allocation3 + $0x100] sm:$0xff]  ;;  %v2215_v13 = vpack.c.bf16 %v1235_v7, %v1234_v17  ;;  %v2235_v17 = vpack.c.bf16 %v1245_v6, %v1244_v9  ;;  %v1262_v7 = vld [vmem:[#allocation5 + $0x130] sm:$0xff] }
 0x64b   : > { %v1067_v18 = vadd.f32 %v1058_v15, %v2610_v10  ;;  %v2183_v25 = vpack.c.bf16 %v1112_v50, %v1110_v24  ;;  %v1115_v10 = vld [vmem:[#allocation3 + $0x150] sm:$0xff]  ;;  %v1236_v15 = vld [vmem:[#allocation5 + $0x60] sm:$0xff] }
 0x64c   : > { %v2642_v21 = vadd.f32 %v1069_v14, %v1068_v16  ;;  %v2185_v27 = vpack.c.bf16 %v1117_v26, %v1115_v10  ;;  %v1237_v16 = vld [vmem:[#allocation5 + $0x68] sm:$0xff]  ;;  %2216 = vmatpush3.bf16.msra.mxu0 %v2215_v13  ;;  %v1238_v50 = vld [vmem:[#allocation5 + $0x70] sm:$0xff]  ;;  %v1256_v10 = vld [vmem:[#allocation5 + $0x100] sm:$0xff] }
 0x64d   : > { %v2640_v20 = vadd.f32 %v1069_v14, %v1067_v18  ;;  %2184 = vmatpush1.bf16.msra.mxu1 %v2183_v25  ;;  %v2217_v14 = vpack.c.bf16 %v1253_v12, %v1252_v19  ;;  %v1254_v18 = vld [vmem:[#allocation5 + $0xf0] sm:$0xff]  ;;  %v1239_v25 = vld [vmem:[#allocation5 + $0x78] sm:$0xff]  ;;  %v1257_v26 = vld [vmem:[#allocation5 + $0x108] sm:$0xff] }
 0x64e   : > { %v1081_v23 = vmul.f32 %v2642_v21, %v2642_v21  ;;  %2186 = vmatprep.subr.bf16.mxu1 %v2185_v27  ;;  %v2223_v27 = vpack.c.bf16 %v1239_v25, %v1238_v50  ;;  %v2225_v28 = vpack.c.bf16 %v1257_v26, %v1256_v10  ;;  %v1263_v19 = vld [vmem:[#allocation5 + $0x138] sm:$0xff]  ;;  %v1246_v13 = vld [vmem:[#allocation5 + $0xb0] sm:$0xff] }
 0x64f   : > { %1074 = vadd.xlane.f32.xlu0 %v2640_v20  ;;  %v1080_v22 = vmul.f32 %v2640_v20, %v2640_v20  ;;  %2218 = vmatprep.subr.bf16.mxu0 %v2217_v14  ;;  %v2237_v12 = vpack.c.bf16 %v1263_v19, %v1262_v7  ;;  %v1247_v14 = vld [vmem:[#allocation5 + $0xb8] sm:$0xff] }
 0x651   : > { %1082 = vadd.xlane.f32.xlu1 %v1080_v22  ;;  %2188 = vmatpush1.bf16.msra.mxu1 %v2187_v30  ;;  %v1255_v22 = vld [vmem:[#allocation5 + $0xf8] sm:$0xff]  ;;  %v1241_v30 = vld [vmem:[#allocation5 + $0x88] sm:$0xff] }
 0x652   : > { %2190 = vmatprep.subr.bf16.mxu1 %v2189_v33  ;;  %v2221_v24 = vpack.c.bf16 %v1255_v22, %v1254_v18  ;;  %v2227_v33 = vpack.c.bf16 %v1241_v30, %v1240_v29 }
 0x653   : > { %1076 = vadd.xlane.f32.xlu0 %v2642_v21 }
 0x655   : > { %1084 = vadd.xlane.f32.xlu1 %v1081_v23  ;;  %2192 = vmatpush1.bf16.msra.mxu1 %v2191_v36  ;;  %v2219_v23 = vpack.c.bf16 %v1237_v16, %v1236_v15  ;;  %v1243_v36 = vld [vmem:[#allocation5 + $0x98] sm:$0xff]  ;;  %v1582_v15 = vld [vmem:[%s2697_s4 + $0x1c] ss:$8 sm:$0x3] }
 0x656   : > { %2194 = vmatprep.subr.bf16.mxu1 %v2193_v39  ;;  %v2231_v39 = vpack.c.bf16 %v1243_v36, %v1242_v35  ;;  %v1148_v16 = vrot.slane %v1582_v15, %v2576_v63  ;;  %v1341_v63 = vld [vmem:[%s2697_s4 + $0x2b] ss:$0 sm:$0xff] }
 0x657   : > { %2220 = vmatpush3.bf16.msra.mxu0 %v2219_v23 }
 0x658   : > { %2222 = vmatprep.subr.bf16.mxu0 %v2221_v24 }
 0x659   : > { %2196 = vmatpush1.bf16.msra.mxu1 %v2195_v42 }
 0x65a   : > { %2198 = vmatprep.subr.bf16.mxu1 %v2197_v45 }
 0x65b   : > { %2224 = vmatpush3.bf16.msra.mxu0 %v2223_v27 }
 0x65c   : > { %2226 = vmatprep.subr.bf16.mxu0 %v2225_v28 }
 0x65d   : > { %2200 = vmatpush1.bf16.msra.mxu1 %v2199_v48 }
 0x65e   : > { %2202 = vmatprep.subr.bf16.mxu1 %v2201_v51 }
 0x65f   : > { %2228 = vmatpush3.bf16.msra.mxu0 %v2227_v33 }
 0x660   : > { %2230 = vmatprep.subr.bf16.mxu0 %v2229_v34 }
 0x661   : > { %2204 = vmatpush1.bf16.msra.mxu1 %v2203_v54 }
 0x662   : > { %2206 = vmatprep.subr.bf16.mxu1 %v2205_v58 }
 0x663   : > { %2232 = vmatpush3.bf16.msra.mxu0 %v2231_v39 }
 0x664   : > { %2234 = vmatprep.subr.bf16.mxu0 %v2233_v40 }
 0x665   : > { %2208 = vmatpush1.bf16.msra.mxu1 %v2207_v61 }
 0x667   : > { %2236 = vmatpush3.bf16.msra.mxu0 %v2235_v17 }
 0x668   : > { %2238 = vmatprep.subr.bf16.mxu0 %v2237_v12 }
 0x6dc   : > { %v1075_v41 = vpop.xlane.xlu0 %1074 }
 0x6dd   : > { %v1078_v42 = vmul.f32 0.0078125, %v1075_v41 }
 0x6de   : > { %v1083_v43 = vpop.xlane.xlu1 %1082 }
 0x6df   : > { %v1088_v44 = vmul.f32 %v1078_v42, %v1078_v42  ;;  %v1086_v45 = vmul.f32 0.0078125, %v1083_v43  ;;  %v1094_v58 = vsub.f32 %v2640_v20, %v1078_v42  ;;  %v1378_v42 = vld [vmem:[#allocation3 + $0x38] sm:$0xff]  ;;  %v1379_v43 = vld [vmem:[#allocation3 + $0x80] sm:$0xff] }
 0x6e0   : > { %v1077_v46 = vpop.xlane.xlu0 %1076 }
 0x6e1   : > { %v1090_v47 = vsub.f32 %v1086_v45, %v1088_v44  ;;  %v1079_v48 = vmul.f32 0.0078125, %v1077_v46  ;;  %v2241_v44 = vpack.c.bf16 %v1379_v43, %v1378_v42  ;;  %v1380_v45 = vld [vmem:[#allocation3 + $0xc8] sm:$0xff]  ;;  %v1381_v46 = vld [vmem:[#allocation3 + $0x110] sm:$0xff] }
 0x6e2   : > { %v1085_v49 = vpop.xlane.xlu1 %1084 }
 0x6e3   : > { %v1092_v11 = vmax.f32 %v1090_v47, 0.0  ;;  %v1089_v51 = vmul.f32 %v1079_v48, %v1079_v48  ;;  %v1087_v52 = vmul.f32 0.0078125, %v1085_v49  ;;  %v1095_v1 = vsub.f32 %v2642_v21, %v1079_v48  ;;  %2242 = vmatprep.subr.bf16.mxu1 %v2241_v44  ;;  %v1382_v48 = vld [vmem:[#allocation3 + $0x158] sm:$0xff]  ;;  %v1383_v49 = vld [vmem:[#allocation3 + $0x1a0] sm:$0xff] }
 0x6e4   : > { %v2239_v21 = vpack.c.bf16 %v1247_v14, %v1246_v13  ;;  %v2245_v47 = vpack.c.bf16 %v1381_v46, %v1380_v45 }
 0x6e5   : > { %v1096_v53 = vadd.f32 1e-05, %v1092_v11  ;;  %v1091_v54 = vsub.f32 %v1087_v52, %v1089_v51  ;;  %v2249_v11 = vpack.c.bf16 %v1383_v49, %v1382_v48  ;;  %v1384_v51 = vld [vmem:[#allocation3 + $0x1e8] sm:$0xff]  ;;  %v1385_v52 = vld [vmem:[#allocation3 + $0x230] sm:$0xff] }
 0x6e6   : > { %2240 = vmatpush3.bf16.msra.mxu0 %v2239_v21 }
 0x6e7   : > { %2325 = vrsqrt.f32 %v1096_v53  ;;  %v1093_v55 = vmax.f32 %v1091_v54, 0.0  ;;  %v2253_v53 = vpack.c.bf16 %v1385_v52, %v1384_v51  ;;  %v1386_v54 = vld [vmem:[#allocation3 + $0x278] sm:$0xff] }
 0x6e9   : > { %v1097_v57 = vadd.f32 1e-05, %v1093_v55  ;;  %v1387_v55 = vld [vmem:[#allocation3 + $0x2c0] sm:$0xff] }
 0x6eb   : > { %2327 = vrsqrt.f32 %v1097_v57  ;;  %v2257_v57 = vpack.c.bf16 %v1387_v55, %v1386_v54 }
 0x6f1   : > { %v2326_v59 = vpop.eup %2325 }
 0x6f2   : > { %v1100_v61 = vmul.f32 %v2326_v59, %v1094_v58  ;;  %v1388_v58 = vld [vmem:[#allocation3 + $0x308] sm:$0xff]  ;;  %v1389_v59 = vld [vmem:[#allocation3 + $0x350] sm:$0xff] }
 0x6f4   : > { %v1102_v2 = vmul.f32 %v1100_v61, %v1072_v60  ;;  %v2261_v61 = vpack.c.bf16 %v1389_v59, %v1388_v58 }
 0x6f5   : > { %v2328_v3 = vpop.eup %2327 }
 0x6f6   : > { %v1104_v4 = vadd.f32 %v1102_v2, %v1073_v0  ;;  %v1101_v56 = vmul.f32 %v2328_v3, %v1095_v1  ;;  %v1392_v2 = vld [vmem:[#allocation3 + $0x428] sm:$0xff]  ;;  %v1393_v3 = vld [vmem:[#allocation3 + $0x470] sm:$0xff] }
 0x6f8   : > { %1216 = vmatmul.mubr.f32.vlgmr.msra.gmra.mrb[8].mxu1 %v1104_v4  ;;  %v1103_v5 = vmul.f32 %v1101_v56, %v1072_v60  ;;  %v1390_v60 = vld [vmem:[#allocation3 + $0x398] sm:$0xff] }
 0x6f9   : > { %1221 = vmatprep.mubr.f32.mxu1 %v2421_v8  ;;  %v1144_v8 = vrot.slane %v1582_v15, %v2573_v62  ;;  %2244 = vmatpush3.bf16.msra.mxu1 %v2241_v44 }
 0x6fa   : > { %v1105_v20 = vadd.f32 %v1103_v5, %v1073_v0  ;;  %2246 = vmatprep.subr.bf16.mxu1 %v2245_v47  ;;  %v1391_v0 = vld [vmem:[#allocation3 + $0x3e0] sm:$0xff] }
 0x6fb   : > { %v2265_v1 = vpack.c.bf16 %v1391_v0, %v1390_v60 }
 0x6fc   : > { %1222 = vmatmul.mubr.f32.gmra.mrb[10].mxu1 %v1105_v20 }
 0x6fd   : > { %2248 = vmatpush3.bf16.msra.mxu1 %v2245_v47 }
 0x6fe   : > { %2250 = vmatprep.subr.bf16.mxu1 %v2249_v11 }
 0x701   : > { %2252 = vmatpush3.bf16.msra.mxu1 %v2249_v11 }
 0x702   : > { %2254 = vmatprep.subr.bf16.mxu1 %v2253_v53 }
 0x705   : > { %2256 = vmatpush3.bf16.msra.mxu1 %v2253_v53 }
 0x706   : > { %2258 = vmatprep.subr.bf16.mxu1 %v2257_v57 }
 0x709   : > { %2260 = vmatpush3.bf16.msra.mxu1 %v2257_v57 }
 0x70a   : > { %2262 = vmatprep.subr.bf16.mxu1 %v2261_v61 }
 0x70d   : > { %2264 = vmatpush3.bf16.msra.mxu1 %v2261_v61 }
 0x70e   : > { %2266 = vmatprep.subr.bf16.mxu1 %v2265_v1 }
 0x711   : > { %2268 = vmatpush3.bf16.msra.mxu1 %v2265_v1 }
 0x7cb   : > { %v1217_v18 = vpop.f32.mrb[8].mxu1 }
 0x7cc   : > { %v1218_v22 = vadd.f32 %v1217_v18, %v1144_v8  ;;  %v1219_v23 = vpop.f32.mrb[9].mxu1 }
 0x7cd   : > { %v1220_v24 = vadd.f32 %v1219_v23, %v1148_v16 }
 0x7ce   : > { %v1228_v10 = vmax.f32 %v1218_v22, 0.0 }
 0x7cf   : > { %v1229_v50 = vmax.f32 %v1220_v24, 0.0  ;;  %v1223_v25 = vpop.f32.mrb[10].mxu1  ;;  %v1344_v24 = vld [vmem:[%s2697_s4 + $0x28] ss:$0 sm:$0xff] }
 0x7d0   : > { %v1224_v26 = vadd.f32 %v1223_v25, %v1144_v8  ;;  %v1225_v27 = vpop.f32.mrb[11].mxu1  ;;  %v1345_v25 = vld [vmem:[%s2697_s4 + $0x29] ss:$0 sm:$0xff] }
 0x7d1   : > { %v1226_v28 = vadd.f32 %v1225_v27, %v1148_v16  ;;  %1328 = vmatprep.mubr.f32.mxu0 %v1229_v50 }
 0x7d2   : > { %1329 = vmatmul.mubr.f32.vlgmr.msra.gmra.mrb[12].mxu0 %v1228_v10  ;;  %v1230_v30 = vmax.f32 %v1224_v26, 0.0 }
 0x7d3   : > { %v1231_v29 = vmax.f32 %v1226_v28, 0.0 }
 0x7d5   : > { %1333 = vmatprep.mubr.f32.mxu0 %v1231_v29 }
 0x7d6   : > { %1334 = vmatmul.mubr.f32.gmra.mrb[14].mxu0 %v1230_v30 }
 0x8a5   : > { %v1722_v31 = vpop.f32.mrb[12].mxu0 }
 0x8a6   : > { %v1723_v62 = vpop.f32.mrb[13].mxu0 }
 0x8a7   : > { %v1724_v32 = vadd.f32 %v1723_v62, %v1722_v31  ;;  %v1394_v62 = vld [vmem:[%s2697_s4 + $0x23] ss:$0 sm:$0xff] }
 0x8a9   : > { %v1339_v33 = vadd.f32 %v1724_v32, %v1104_v4  ;;  %v1725_v34 = vpop.f32.mrb[14].mxu0  ;;  %v2269_v4 = vpack.c.bf16 %v1393_v3, %v1392_v2 }
 0x8aa   : > { %v1726_v35 = vpop.f32.mrb[15].mxu0 }
 0x8ab   : > { %v1727_v36 = vadd.f32 %v1726_v35, %v1725_v34  ;;  %v2667_v37 = vadd.f32 %v1341_v63, %v1339_v33  ;;  %2270 = vmatprep.subr.bf16.mxu1 %v2269_v4 }
 0x8ac   : > { %2272 = vmatpush3.bf16.msra.mxu1 %v2269_v4 }
 0x8ad   : > { %v1340_v38 = vadd.f32 %v1727_v36, %v1105_v20  ;;  %1346 = vadd.xlane.f32.xlu0 %v2667_v37  ;;  %v1352_v39 = vmul.f32 %v2667_v37, %v2667_v37 }
 0x8af   : > { %v2672_v40 = vadd.f32 %v1341_v63, %v1340_v38 }
 0x8b1   : > { %1354 = vadd.xlane.f32.xlu0 %v1352_v39  ;;  %1348 = vadd.xlane.f32.xlu1 %v2672_v40  ;;  %v1353_v41 = vmul.f32 %v2672_v40, %v2672_v40 }
 0x8b5   : > { %1356 = vadd.xlane.f32.xlu1 %v1353_v41 }
 0x93a   : > { %v1347_v56 = vpop.xlane.xlu0 %1346 }
 0x93b   : > { %v1350_v5 = vmul.f32 0.0078125, %v1347_v56 }
 0x93d   : > { %v1360_v6 = vmul.f32 %v1350_v5, %v1350_v5  ;;  %v1366_v22 = vsub.f32 %v2667_v37, %v1350_v5 }
 0x93e   : > { %v1355_v20 = vpop.xlane.xlu0 %1354  ;;  %v1349_v9 = vpop.xlane.xlu1 %1348 }
 0x93f   : > { %v1358_v17 = vmul.f32 0.0078125, %v1355_v20  ;;  %v1351_v7 = vmul.f32 0.0078125, %v1349_v9 }
 0x941   : > { %v1362_v19 = vsub.f32 %v1358_v17, %v1360_v6  ;;  %v1361_v14 = vmul.f32 %v1351_v7, %v1351_v7  ;;  %v1367_v10 = vsub.f32 %v2672_v40, %v1351_v7 }
 0x942   : > { %v1357_v12 = vpop.xlane.xlu1 %1356 }
 0x943   : > { %v1364_v13 = vmax.f32 %v1362_v19, 0.0  ;;  %v1359_v21 = vmul.f32 0.0078125, %v1357_v12 }
 0x945   : > { %v1368_v15 = vadd.f32 1e-05, %v1364_v13  ;;  %v1363_v8 = vsub.f32 %v1359_v21, %v1361_v14 }
 0x947   : > { %2329 = vrsqrt.f32 %v1368_v15  ;;  %v1365_v16 = vmax.f32 %v1363_v8, 0.0 }
 0x949   : > { %v1369_v18 = vadd.f32 1e-05, %v1365_v16 }
 0x94b   : > { %2331 = vrsqrt.f32 %v1369_v18 }
 0x951   : > { %v2330_v23 = vpop.eup %2329 }
 0x952   : > { %v1372_v50 = vmul.f32 %v2330_v23, %v1366_v22 }
 0x954   : > { %v1374_v26 = vmul.f32 %v1372_v50, %v1344_v24 }
 0x955   : > { %v2332_v27 = vpop.eup %2331 }
 0x956   : > { %v1373_v28 = vmul.f32 %v2332_v27, %v1367_v10  ;;  %v1376_v29 = vadd.f32 %v1374_v26, %v1345_v25 }
 0x958   : > { %v1375_v30 = vmul.f32 %v1373_v28, %v1344_v24  ;;  %1978 = vmatprep.mubr.f32.mxu1 %v1376_v29 }
 0x95a   : > { %v1377_v31 = vadd.f32 %v1375_v30, %v1345_v25 }
 0x95c   : > { %1979 = vmatmul.mubr.f32.vlgmr.msra.gmra.mrb[12].mxu1 %v1377_v31 }
 0xa2f   : > { %v1980_v32 = vpop.f32.mrb[12].mxu1 }
 0xa30   : > { %v1467_v63 = vadd.f32 %v1980_v32, %v1394_v62  ;;  %v1461_v33 = vpop.f32.mrb[13].mxu1 }
 0xa31   : > { %v1462_v34 = vadd.f32 %v1461_v33, %v1394_v62 }
 0xa32   : > { %v1584_v35 = vmul.f32 -1.442695, %v1467_v63 }
 0xa33   : > { %v1583_v36 = vmul.f32 -1.442695, %v1462_v34 }
 0xa34   : > { %2333 = vpow2.f32 %v1584_v35 }
 0xa35   : > { %2335 = vpow2.f32 %v1583_v36 }
 0xa3e   : > { %v2334_v37 = vpop.eup %2333 }
 0xa3f   : > { %v2336_v38 = vpop.eup %2335  ;;  %v1477_v39 = vadd.f32 1.0, %v2334_v37 }
 0xa40   : > { %v1476_v40 = vadd.f32 1.0, %v2336_v38 }
 0xa41   : > { %2337 = vrcp.f32 %v1477_v39 }
 0xa42   : > { %2339 = vrcp.f32 %v1476_v40 }
 0xa4b   : > { %v2338_v41 = vpop.eup %2337 }
 0xa4c   : > { %v2340_v42 = vpop.eup %2339  ;;  %1483 = vst [vmem:[%s2550_s15 + $0x8] sm:$0xff] %v2338_v41 }
 0xa4d   : > { %1482 = vst [vmem:[%s2550_s15] sm:$0xff] %v2340_v42 }
 0xa4e PF: > { %s19_s21 = sadd.s32 1, %s2411_s21  }
 0xa4f   : > { %p16_p10 = scmp.ge.s32.totalorder %s19_s21, 6  }
 0xa51   :  { %18 = sbr.rel (!%p16_p10) target bundleno = 2 (0x2), region = 94 }
 0xa58   :  { %1511 = vsyncpa [#allocation4], 1 }
 0xa59   :  { %1513 = vsyncpa [#allocation4 + $0x1], 1 }
 0xa5a   :  { %1514 = vsyncpa [#allocation6], 1 }

</bundles_post_ra>
